<compile_context>
chip_gen: v7x
topology: tpu7x:2x2x1
jax: 0.10.0
libtpu: 0.0.40
codegen_flags: <defaults>
</compile_context>

<pallas_src>
import functools

import numpy as np
import jax
import jax.numpy as jnp
from jax.experimental import pallas as pl
from jax.experimental.pallas import tpu as pltpu


# ----------------------------------------------------------------------------------------------
# Sub-pixel (phase) decomposition of ConvTranspose2d
# ----------------------------------------------------------------------------------------------
def _phase_meta(size_in, k, s, p):
    """Metadata for one spatial dim.

    Output positions o with (o % s) == a ("phase a") form a dense stride-1 convolution of the
    input with taps k_idx = r + j*s (j = 0..T-1) reading input index m + b - j, where o = a + m*s.
    Returns (size_out, rows_per_phase, [(r, b, T)] per phase, pad_lo, pad_hi).
    """
    assert (k - 2 * p) % s == 0, (
        "TODO(synk): ragged phase counts ((K - 2*padding) % stride != 0) not implemented")
    size_out = (size_in - 1) * s - 2 * p + k
    assert size_out > 0
    n2 = size_out // s
    meta, pad_lo, pad_hi = [], 0, 0
    for a in range(s):
        r = (a + p) % s
        b = (a + p) // s
        t = -(-(k - r) // s)
        meta.append((r, b, t))
        pad_lo = max(pad_lo, t - 1 - b)
        pad_hi = max(pad_hi, n2 + b - size_in)
    return size_out, n2, meta, max(pad_lo, 0), max(pad_hi, 0)


def _largest_divisor(n, ok):
    best = None
    for d in range(1, n + 1):
        if n % d == 0 and ok(d):
            best = d
    return best


def _pick_row_band(h2, w2, cout, n_phase, budget_bytes=2 << 20):
    """Rows-per-band for pass 1: divides H2, keeps the (band*W2, Cout) store 8-sublane aligned,
    and keeps the double-buffered per-step blocks comfortably inside scoped VMEM (sized so the
    same tiles also fit v7x's smaller 64 MiB physical VMEM)."""
    def ok(d):
        aligned = (d * w2) % 8 == 0 or d == h2
        return aligned and d * w2 * cout * n_phase * 2 <= budget_bytes
    return _largest_divisor(h2, ok) or h2


def _pick_row_tile(total_rows, cout, budget_bytes=4 << 20):
    """Rows-per-tile for the elementwise pass 2."""
    def ok(d):
        aligned = d % 8 == 0 or d == total_rows
        return aligned and d * cout * 6 <= budget_bytes        # bf16 in + f32 out per block
    return _largest_divisor(total_rows, ok) or total_rows


# ----------------------------------------------------------------------------------------------
# Pallas kernels
# ----------------------------------------------------------------------------------------------
def _convt_stats_kernel(x_ref, w_ref, y_ref, stats_ref, *, tap_offsets, band_rows, w2):
    """Pass 1: sub-pixel ConvTranspose for every phase of one (batch, row-band) tile, plus
    per-tile partial BatchNorm statistics.

      x_ref:     (1, Hp, Wp, Cin)             zero-padded input (f32), full spatial extent
      w_ref:     (s*s, Tmax*Tmax, Cin, Cout)  per-phase / per-tap weights (bf16)
      y_ref:     (1, s*s, band_rows*W2, Cout) pre-BN conv output (bf16)
      stats_ref: (1, 1, 2, Cout)              [sum, sum of squares] over this tile (f32)
    """
    h0 = pl.program_id(1) * band_rows           # first phase-row of this band
    rows = band_rows * w2
    cout = y_ref.shape[-1]
    ssum = jnp.zeros((1, cout), jnp.float32)
    ssq = jnp.zeros((1, cout), jnp.float32)

    for a, taps in enumerate(tap_offsets):      # static loop: s*s sub-pixel phases
        acc = jnp.zeros((rows, cout), jnp.float32)
        # Static loop over the ceil(K/s)^2 non-zero taps of this phase; each tap is one bf16 MXU
        # matmul with contraction depth Cin, accumulated in f32.  (v1 ran K*K taps over a
        # zero-upsampled, HBM-materialized im2col tensor at Precision.HIGHEST.)
        # TODO(synk): fuse the taps into a single (rows, T*T*Cin) contraction via an in-VMEM
        # lane-axis concat once Cin is large enough for that to pay off.
        for k, (dh, dw) in enumerate(taps):
            sl = x_ref[0, pl.ds(h0 + dh, band_rows), pl.ds(dw, w2), :]
            sl = sl.reshape(rows, sl.shape[-1]).astype(jnp.bfloat16)
            acc = acc + jnp.dot(sl, w_ref[a, k], preferred_element_type=jnp.float32)
        y_ref[0, a, :, :] = acc.astype(y_ref.dtype)
        ssum = ssum + jnp.sum(acc, axis=0, keepdims=True)
        ssq = ssq + jnp.sum(acc * acc, axis=0, keepdims=True)

    stats_ref[0, 0, 0:1, :] = ssum
    stats_ref[0, 0, 1:2, :] = ssq


def _bn_lrelu_kernel(y_ref, scale_ref, shift_ref, o_ref, *, slope):
    """Pass 2: y * scale + shift (folded BatchNorm affine), then LeakyReLU.  Math in f32."""
    z = y_ref[...].astype(jnp.float32) * scale_ref[...] + shift_ref[...]
    o_ref[...] = jnp.where(z >= 0.0, z, slope * z).astype(o_ref.dtype)


# ----------------------------------------------------------------------------------------------
# Wrapper
# ----------------------------------------------------------------------------------------------
def basic_convT_forward(x_nchw, w_t, bias, gamma, beta, *, stride, padding,
                        eps=1e-5, slope=0.01):
    """Equivalent of basicConvT(x) forward (training-mode BatchNorm stats), NCHW in / NCHW out."""
    # A per-channel conv bias added right before training-mode BatchNorm is exactly cancelled by
    # the mean subtraction (variance unchanged) -> intentionally ignored (dead work).
    del bias

    N, Cin, H, W = x_nchw.shape
    cin_w, Cout, K, K2 = w_t.shape
    assert Cin == cin_w and K == K2
    s, p = int(stride), int(padding)

    Ho, H2, meta_h, pad_t, pad_b = _phase_meta(H, K, s, p)
    Wo, W2, meta_w, pad_l, pad_r = _phase_meta(W, K, s, p)
    tmax = -(-K // s)
    s2 = s * s

    # ---- glue on the (small) input / weights ---------------------------------------------------
    x = jnp.transpose(x_nchw, (0, 2, 3, 1))                            # NHWC
    x_pad = jnp.pad(x, ((0, 0), (pad_t, pad_b), (pad_l, pad_r), (0, 0)))
    Hp, Wp = H + pad_t + pad_b, W + pad_l + pad_r

    tap_offsets, w_taps = [], []
    for ah in range(s):
        rh, bh, th = meta_h[ah]
        for aw in range(s):
            rw, bw, tw = meta_w[aw]
            taps, wm = [], []
            for jh in range(tmax):
                for jw in range(tmax):
                    if jh < th and jw < tw:
                        taps.append((bh - jh + pad_t, bw - jw + pad_l))
                        wm.append(w_t[:, :, rh + jh * s, rw + jw * s])  # (Cin, Cout)
                    else:  # padded tap slot: zero weight, any in-bounds offset
                        taps.append((pad_t, pad_l))
                        wm.append(jnp.zeros((Cin, Cout), w_t.dtype))
            tap_offsets.append(tuple(taps))
            w_taps.append(jnp.stack(wm, axis=0))                        # (tmax^2, Cin, Cout)
    tap_offsets = tuple(tap_offsets)
    w_ph = jnp.stack(w_taps, axis=0).astype(jnp.bfloat16)               # (s^2, tmax^2, Cin, Cout)

    # ---- pass 1: phase-decomposed ConvTranspose + partial BN statistics ------------------------
    # TODO(synk): for very large images also tile the input spatially (with halos); currently the
    # padded input of one batch sample is kept fully VMEM-resident per grid step.
    band = _pick_row_band(H2, W2, Cout, s2)
    n_band = H2 // band
    s_band = band * W2
    s_full = H2 * W2

    y, stats = pl.pallas_call(
        functools.partial(_convt_stats_kernel, tap_offsets=tap_offsets,
                          band_rows=band, w2=W2),
        grid=(N, n_band),
        in_specs=[
            pl.BlockSpec((1, Hp, Wp, Cin), lambda n, t: (n, 0, 0, 0)),
            pl.BlockSpec((s2, tmax * tmax, Cin, Cout), lambda n, t: (0, 0, 0, 0)),
        ],
        out_specs=[
            pl.BlockSpec((1, s2, s_band, Cout), lambda n, t: (n, 0, t, 0)),
            pl.BlockSpec((1, 1, 2, Cout), lambda n, t: (n, t, 0, 0)),
        ],
        out_shape=[
            jax.ShapeDtypeStruct((N, s2, s_full, Cout), jnp.bfloat16),
            jax.ShapeDtypeStruct((N, n_band, 2, Cout), jnp.float32),
        ],
        compiler_params=pltpu.CompilerParams(
            dimension_semantics=("parallel", "parallel"),
            vmem_limit_bytes=32 * 1024 * 1024,
        ),
    )(x_pad, w_ph)

    # ---- finalize the batch statistics (tiny per-channel math) ---------------------------------
    count = jnp.float32(N * Ho * Wo)
    tot = jnp.sum(stats, axis=(0, 1))                         # (2, Cout)
    mean = tot[0] / count
    var = jnp.maximum(tot[1] / count - mean * mean, 0.0)      # biased var, as BN training mode
    rstd = jax.lax.rsqrt(var + eps)
    scale = gamma.astype(jnp.float32) * rstd
    shift = beta.astype(jnp.float32) - mean * scale

    # ---- pass 2: tiled normalize + LeakyReLU ----------------------------------------------------
    total_rows = N * s2 * s_full                              # == N * Ho * Wo
    rows_t = _pick_row_tile(total_rows, Cout)
    out_flat = pl.pallas_call(
        functools.partial(_bn_lrelu_kernel, slope=slope),
        grid=(total_rows // rows_t,),
        in_specs=[
            pl.BlockSpec((rows_t, Cout), lambda i: (i, 0)),
            pl.BlockSpec((1, Cout), lambda i: (0, 0)),
            pl.BlockSpec((1, Cout), lambda i: (0, 0)),
        ],
        out_specs=pl.BlockSpec((rows_t, Cout), lambda i: (i, 0)),
        out_shape=jax.ShapeDtypeStruct((total_rows, Cout), jnp.float32),
        compiler_params=pltpu.CompilerParams(
            dimension_semantics=("parallel",),
            vmem_limit_bytes=32 * 1024 * 1024,
        ),
    )(y.reshape(total_rows, Cout), scale.reshape(1, Cout), shift.reshape(1, Cout))

    # ---- sub-pixel (pixel-shuffle) assembly back to NCHW ----------------------------------------
    out = out_flat.reshape(N, s, s, H2, W2, Cout)             # (n, phase_h, phase_w, m, l, c)
    out = jnp.transpose(out, (0, 5, 3, 1, 4, 2)).reshape(N, Cout, Ho, Wo)
    return out


# ----------------------------------------------------------------------------------------------
# Independent reference + test
# ----------------------------------------------------------------------------------------------
def _reference_numpy(x, w_t, bias, gamma, beta, stride, padding, eps=1e-5, slope=0.01):
    """Float64 reference of ConvTranspose2d + BatchNorm2d(train) + LeakyReLU."""
    x = np.asarray(x, np.float64)
    w = np.asarray(w_t, np.float64)
    N, Cin, H, W = x.shape
    _, Cout, K, _ = w.shape
    Ho = (H - 1) * stride - 2 * padding + K
    Wo = (W - 1) * stride - 2 * padding + K
    y = np.zeros((N, Cout, Ho, Wo), np.float64)
    for n in range(N):
        for ci in range(Cin):
            for ih in range(H):
                for iw in range(W):
                    for kh in range(K):
                        oh = ih * stride - padding + kh
                        if not (0 <= oh < Ho):
                            continue
                        for kw in range(K):
                            ow = iw * stride - padding + kw
                            if not (0 <= ow < Wo):
                                continue
                            y[n, :, oh, ow] += x[n, ci, ih, iw] * w[ci, :, kh, kw]
    y += np.asarray(bias, np.float64)[None, :, None, None]
    mean = y.mean(axis=(0, 2, 3), keepdims=True)
    var = y.var(axis=(0, 2, 3), keepdims=True)
    yh = (y - mean) / np.sqrt(var + eps)
    yh = yh * np.asarray(gamma, np.float64)[None, :, None, None] \
         + np.asarray(beta, np.float64)[None, :, None, None]
    return np.where(yh >= 0, yh, slope * yh)


if __name__ == "__main__":
    # basicConvT(in_channel=4, out_channel=8, kernel_size=4, stride=2, padding=1)
    N, Cin, H, W = 2, 4, 8, 8
    Cout, K, stride, padding = 8, 4, 2, 1

    key = jax.random.PRNGKey(0)
    k1, k2, k3, k4, k5 = jax.random.split(key, 5)
    x = jax.random.normal(k1, (N, Cin, H, W), jnp.float32)
    w_t = jax.random.normal(k2, (Cin, Cout, K, K), jnp.float32) * 0.1   # ConvTranspose2d weight
    bias = jax.random.normal(k3, (Cout,), jnp.float32) * 0.1            # ConvTranspose2d bias
    gamma = 1.0 + 0.1 * jax.random.normal(k4, (Cout,), jnp.float32)     # BN weight
    beta = 0.1 * jax.random.normal(k5, (Cout,), jnp.float32)            # BN bias

    fwd = jax.jit(functools.partial(basic_convT_forward, stride=stride, padding=padding))
    out = jax.block_until_ready(fwd(x, w_t, bias, gamma, beta))

    ref = _reference_numpy(np.array(x), np.array(w_t), np.array(bias),
                           np.array(gamma), np.array(beta), stride, padding)
    assert out.shape == ref.shape == (N, Cout, 2 * H, 2 * W)
    # bf16 MXU operands + bf16 pre-BN intermediate -> 2e-2 tolerance vs the f64 reference.
    np.testing.assert_allclose(np.array(out), ref, atol=2e-2, rtol=2e-2)
    print("KERNEL_OK")
</pallas_src>

<mosaic_0001>
module attributes {stable_mosaic.version = 11 : i64} {
  func.func @_convt_stats_kernel(%arg0: i32, %arg1: i32, %arg2: memref<1x10x10x4xf32, #tpu.memory_space<vmem>>, %arg3: memref<4x4x4x8xbf16, #tpu.memory_space<vmem>>, %arg4: memref<1x4x64x8xbf16, #tpu.memory_space<vmem>>, %arg5: memref<1x1x2x8xf32, #tpu.memory_space<vmem>>) attributes {dimension_semantics = [#tpu.dimension_semantics<parallel>, #tpu.dimension_semantics<parallel>], iteration_bounds = array<i64: 2, 1>, scalar_prefetch = 0 : i64, scratch_operands = 0 : i64, tpu.core_type = #tpu.core_type<tc>, window_params = [{transform_indices = @transform_0, window_bounds = array<i64: 1, 10, 10, 4>}, {pipeline_mode = #tpu.pipeline_mode<synchronous>, transform_indices = @transform_1, window_bounds = array<i64: 4, 4, 4, 8>}, {transform_indices = @transform_2, window_bounds = array<i64: 1, 4, 64, 8>}, {transform_indices = @transform_3, window_bounds = array<i64: 1, 1, 2, 8>}]} {
    %c8_i32 = arith.constant 8 : i32
    %0 = arith.muli %arg1, %c8_i32 : i32
    %cst = arith.constant 0.000000e+00 : f32
    %1 = vector.broadcast %cst : f32 to vector<1x8xf32>
    %cst_0 = arith.constant 0.000000e+00 : f32
    %2 = vector.broadcast %cst_0 : f32 to vector<1x8xf32>
    %cst_1 = arith.constant 0.000000e+00 : f32
    %3 = vector.broadcast %cst_1 : f32 to vector<64x8xf32>
    %c1_i32 = arith.constant 1 : i32
    %4 = arith.addi %0, %c1_i32 : i32
    %c0 = arith.constant 0 : index
    %5 = arith.index_cast %4 : i32 to index
    %c1 = arith.constant 1 : index
    %c0_2 = arith.constant 0 : index
    %6 = vector.load %arg2[%c0, %5, %c1, %c0_2] : memref<1x10x10x4xf32, #tpu.memory_space<vmem>>, vector<1x8x8x4xf32>
    %7 = vector.shape_cast %6 : vector<1x8x8x4xf32> to vector<8x8x4xf32>
    %8 = vector.shape_cast %7 : vector<8x8x4xf32> to vector<64x4xf32>
    %9 = arith.truncf %8 : vector<64x4xf32> to vector<64x4xbf16>
    %c0_3 = arith.constant 0 : index
    %c0_4 = arith.constant 0 : index
    %c0_5 = arith.constant 0 : index
    %c0_6 = arith.constant 0 : index
    %10 = vector.load %arg3[%c0_3, %c0_4, %c0_5, %c0_6] : memref<4x4x4x8xbf16, #tpu.memory_space<vmem>>, vector<1x1x4x8xbf16>
    %11 = vector.shape_cast %10 : vector<1x1x4x8xbf16> to vector<4x8xbf16>
    %cst_7 = arith.constant dense<0.000000e+00> : vector<64x8xf32>
    %12 = tpu.matmul %9, %11, %cst_7 {dimension_numbers = #tpu.dot_dimension_numbers<[1], [0], [0], [1], [0, 0, 1, 1], [], []>} : vector<64x4xbf16>, vector<4x8xbf16>, vector<64x8xf32> -> vector<64x8xf32>
    %13 = arith.addf %3, %12 : vector<64x8xf32>
    %c1_i32_8 = arith.constant 1 : i32
    %14 = arith.addi %0, %c1_i32_8 : i32
    %c0_9 = arith.constant 0 : index
    %15 = arith.index_cast %14 : i32 to index
    %c0_10 = arith.constant 0 : index
    %c0_11 = arith.constant 0 : index
    %16 = vector.load %arg2[%c0_9, %15, %c0_10, %c0_11] : memref<1x10x10x4xf32, #tpu.memory_space<vmem>>, vector<1x8x8x4xf32>
    %17 = vector.shape_cast %16 : vector<1x8x8x4xf32> to vector<8x8x4xf32>
    %18 = vector.shape_cast %17 : vector<8x8x4xf32> to vector<64x4xf32>
    %19 = arith.truncf %18 : vector<64x4xf32> to vector<64x4xbf16>
    %c0_12 = arith.constant 0 : index
    %c1_13 = arith.constant 1 : index
    %c0_14 = arith.constant 0 : index
    %c0_15 = arith.constant 0 : index
    %20 = vector.load %arg3[%c0_12, %c1_13, %c0_14, %c0_15] : memref<4x4x4x8xbf16, #tpu.memory_space<vmem>>, vector<1x1x4x8xbf16>
    %21 = vector.shape_cast %20 : vector<1x1x4x8xbf16> to vector<4x8xbf16>
    %cst_16 = arith.constant dense<0.000000e+00> : vector<64x8xf32>
    %22 = tpu.matmul %19, %21, %cst_16 {dimension_numbers = #tpu.dot_dimension_numbers<[1], [0], [0], [1], [0, 0, 1, 1], [], []>} : vector<64x4xbf16>, vector<4x8xbf16>, vector<64x8xf32> -> vector<64x8xf32>
    %23 = arith.addf %13, %22 : vector<64x8xf32>
    %c0_i32 = arith.constant 0 : i32
    %24 = arith.addi %0, %c0_i32 : i32
    %c0_17 = arith.constant 0 : index
    %25 = arith.index_cast %24 : i32 to index
    %c1_18 = arith.constant 1 : index
    %c0_19 = arith.constant 0 : index
    %26 = vector.load %arg2[%c0_17, %25, %c1_18, %c0_19] : memref<1x10x10x4xf32, #tpu.memory_space<vmem>>, vector<1x8x8x4xf32>
    %27 = vector.shape_cast %26 : vector<1x8x8x4xf32> to vector<8x8x4xf32>
    %28 = vector.shape_cast %27 : vector<8x8x4xf32> to vector<64x4xf32>
    %29 = arith.truncf %28 : vector<64x4xf32> to vector<64x4xbf16>
    %c0_20 = arith.constant 0 : index
    %c2 = arith.constant 2 : index
    %c0_21 = arith.constant 0 : index
    %c0_22 = arith.constant 0 : index
    %30 = vector.load %arg3[%c0_20, %c2, %c0_21, %c0_22] : memref<4x4x4x8xbf16, #tpu.memory_space<vmem>>, vector<1x1x4x8xbf16>
    %31 = vector.shape_cast %30 : vector<1x1x4x8xbf16> to vector<4x8xbf16>
    %cst_23 = arith.constant dense<0.000000e+00> : vector<64x8xf32>
    %32 = tpu.matmul %29, %31, %cst_23 {dimension_numbers = #tpu.dot_dimension_numbers<[1], [0], [0], [1], [0, 0, 1, 1], [], []>} : vector<64x4xbf16>, vector<4x8xbf16>, vector<64x8xf32> -> vector<64x8xf32>
    %33 = arith.addf %23, %32 : vector<64x8xf32>
    %c0_i32_24 = arith.constant 0 : i32
    %34 = arith.addi %0, %c0_i32_24 : i32
    %c0_25 = arith.constant 0 : index
    %35 = arith.index_cast %34 : i32 to index
    %c0_26 = arith.constant 0 : index
    %c0_27 = arith.constant 0 : index
    %36 = vector.load %arg2[%c0_25, %35, %c0_26, %c0_27] : memref<1x10x10x4xf32, #tpu.memory_space<vmem>>, vector<1x8x8x4xf32>
    %37 = vector.shape_cast %36 : vector<1x8x8x4xf32> to vector<8x8x4xf32>
    %38 = vector.shape_cast %37 : vector<8x8x4xf32> to vector<64x4xf32>
    %39 = arith.truncf %38 : vector<64x4xf32> to vector<64x4xbf16>
    %c0_28 = arith.constant 0 : index
    %c3 = arith.constant 3 : index
    %c0_29 = arith.constant 0 : index
    %c0_30 = arith.constant 0 : index
    %40 = vector.load %arg3[%c0_28, %c3, %c0_29, %c0_30] : memref<4x4x4x8xbf16, #tpu.memory_space<vmem>>, vector<1x1x4x8xbf16>
    %41 = vector.shape_cast %40 : vector<1x1x4x8xbf16> to vector<4x8xbf16>
    %cst_31 = arith.constant dense<0.000000e+00> : vector<64x8xf32>
    %42 = tpu.matmul %39, %41, %cst_31 {dimension_numbers = #tpu.dot_dimension_numbers<[1], [0], [0], [1], [0, 0, 1, 1], [], []>} : vector<64x4xbf16>, vector<4x8xbf16>, vector<64x8xf32> -> vector<64x8xf32>
    %43 = arith.addf %33, %42 : vector<64x8xf32>
    %44 = arith.truncf %43 : vector<64x8xf32> to vector<64x8xbf16>
    %c0_32 = arith.constant 0 : index
    %c0_33 = arith.constant 0 : index
    %c0_34 = arith.constant 0 : index
    %c0_35 = arith.constant 0 : index
    %45 = vector.load %arg4[%c0_32, %c0_33, %c0_34, %c0_35] : memref<1x4x64x8xbf16, #tpu.memory_space<vmem>>, vector<1x1x64x8xbf16>
    %46 = vector.shape_cast %45 : vector<1x1x64x8xbf16> to vector<64x8xbf16>
    %47 = vector.shape_cast %44 : vector<64x8xbf16> to vector<1x1x64x8xbf16>
    tpu.vector_store %arg4[%c0_32, %c0_33, %c0_34, %c0_35], %47 {strides = array<i32>} : memref<1x4x64x8xbf16, #tpu.memory_space<vmem>>, vector<1x1x64x8xbf16>,
    %cst_36 = arith.constant dense<0.000000e+00> : vector<8xf32>
    %48 = vector.multi_reduction <add>, %43, %cst_36 [0] : vector<64x8xf32> to vector<8xf32>
    %49 = vector.shape_cast %48 : vector<8xf32> to vector<1x8xf32>
    %50 = arith.addf %1, %49 : vector<1x8xf32>
    %51 = arith.mulf %43, %43 : vector<64x8xf32>
    %cst_37 = arith.constant dense<0.000000e+00> : vector<8xf32>
    %52 = vector.multi_reduction <add>, %51, %cst_37 [0] : vector<64x8xf32> to vector<8xf32>
    %53 = vector.shape_cast %52 : vector<8xf32> to vector<1x8xf32>
    %54 = arith.addf %2, %53 : vector<1x8xf32>
    %cst_38 = arith.constant 0.000000e+00 : f32
    %55 = vector.broadcast %cst_38 : f32 to vector<64x8xf32>
    %c1_i32_39 = arith.constant 1 : i32
    %56 = arith.addi %0, %c1_i32_39 : i32
    %c0_40 = arith.constant 0 : index
    %57 = arith.index_cast %56 : i32 to index
    %c2_41 = arith.constant 2 : index
    %c0_42 = arith.constant 0 : index
    %58 = vector.load %arg2[%c0_40, %57, %c2_41, %c0_42] : memref<1x10x10x4xf32, #tpu.memory_space<vmem>>, vector<1x8x8x4xf32>
    %59 = vector.shape_cast %58 : vector<1x8x8x4xf32> to vector<8x8x4xf32>
    %60 = vector.shape_cast %59 : vector<8x8x4xf32> to vector<64x4xf32>
    %61 = arith.truncf %60 : vector<64x4xf32> to vector<64x4xbf16>
    %c1_43 = arith.constant 1 : index
    %c0_44 = arith.constant 0 : index
    %c0_45 = arith.constant 0 : index
    %c0_46 = arith.constant 0 : index
    %62 = vector.load %arg3[%c1_43, %c0_44, %c0_45, %c0_46] : memref<4x4x4x8xbf16, #tpu.memory_space<vmem>>, vector<1x1x4x8xbf16>
    %63 = vector.shape_cast %62 : vector<1x1x4x8xbf16> to vector<4x8xbf16>
    %cst_47 = arith.constant dense<0.000000e+00> : vector<64x8xf32>
    %64 = tpu.matmul %61, %63, %cst_47 {dimension_numbers = #tpu.dot_dimension_numbers<[1], [0], [0], [1], [0, 0, 1, 1], [], []>} : vector<64x4xbf16>, vector<4x8xbf16>, vector<64x8xf32> -> vector<64x8xf32>
    %65 = arith.addf %55, %64 : vector<64x8xf32>
    %c1_i32_48 = arith.constant 1 : i32
    %66 = arith.addi %0, %c1_i32_48 : i32
    %c0_49 = arith.constant 0 : index
    %67 = arith.index_cast %66 : i32 to index
    %c1_50 = arith.constant 1 : index
    %c0_51 = arith.constant 0 : index
    %68 = vector.load %arg2[%c0_49, %67, %c1_50, %c0_51] : memref<1x10x10x4xf32, #tpu.memory_space<vmem>>, vector<1x8x8x4xf32>
    %69 = vector.shape_cast %68 : vector<1x8x8x4xf32> to vector<8x8x4xf32>
    %70 = vector.shape_cast %69 : vector<8x8x4xf32> to vector<64x4xf32>
    %71 = arith.truncf %70 : vector<64x4xf32> to vector<64x4xbf16>
    %c1_52 = arith.constant 1 : index
    %c1_53 = arith.constant 1 : index
    %c0_54 = arith.constant 0 : index
    %c0_55 = arith.constant 0 : index
    %72 = vector.load %arg3[%c1_52, %c1_53, %c0_54, %c0_55] : memref<4x4x4x8xbf16, #tpu.memory_space<vmem>>, vector<1x1x4x8xbf16>
    %73 = vector.shape_cast %72 : vector<1x1x4x8xbf16> to vector<4x8xbf16>
    %cst_56 = arith.constant dense<0.000000e+00> : vector<64x8xf32>
    %74 = tpu.matmul %71, %73, %cst_56 {dimension_numbers = #tpu.dot_dimension_numbers<[1], [0], [0], [1], [0, 0, 1, 1], [], []>} : vector<64x4xbf16>, vector<4x8xbf16>, vector<64x8xf32> -> vector<64x8xf32>
    %75 = arith.addf %65, %74 : vector<64x8xf32>
    %c0_i32_57 = arith.constant 0 : i32
    %76 = arith.addi %0, %c0_i32_57 : i32
    %c0_58 = arith.constant 0 : index
    %77 = arith.index_cast %76 : i32 to index
    %c2_59 = arith.constant 2 : index
    %c0_60 = arith.constant 0 : index
    %78 = vector.load %arg2[%c0_58, %77, %c2_59, %c0_60] : memref<1x10x10x4xf32, #tpu.memory_space<vmem>>, vector<1x8x8x4xf32>
    %79 = vector.shape_cast %78 : vector<1x8x8x4xf32> to vector<8x8x4xf32>
    %80 = vector.shape_cast %79 : vector<8x8x4xf32> to vector<64x4xf32>
    %81 = arith.truncf %80 : vector<64x4xf32> to vector<64x4xbf16>
    %c1_61 = arith.constant 1 : index
    %c2_62 = arith.constant 2 : index
    %c0_63 = arith.constant 0 : index
    %c0_64 = arith.constant 0 : index
    %82 = vector.load %arg3[%c1_61, %c2_62, %c0_63, %c0_64] : memref<4x4x4x8xbf16, #tpu.memory_space<vmem>>, vector<1x1x4x8xbf16>
    %83 = vector.shape_cast %82 : vector<1x1x4x8xbf16> to vector<4x8xbf16>
    %cst_65 = arith.constant dense<0.000000e+00> : vector<64x8xf32>
    %84 = tpu.matmul %81, %83, %cst_65 {dimension_numbers = #tpu.dot_dimension_numbers<[1], [0], [0], [1], [0, 0, 1, 1], [], []>} : vector<64x4xbf16>, vector<4x8xbf16>, vector<64x8xf32> -> vector<64x8xf32>
    %85 = arith.addf %75, %84 : vector<64x8xf32>
    %c0_i32_66 = arith.constant 0 : i32
    %86 = arith.addi %0, %c0_i32_66 : i32
    %c0_67 = arith.constant 0 : index
    %87 = arith.index_cast %86 : i32 to index
    %c1_68 = arith.constant 1 : index
    %c0_69 = arith.constant 0 : index
    %88 = vector.load %arg2[%c0_67, %87, %c1_68, %c0_69] : memref<1x10x10x4xf32, #tpu.memory_space<vmem>>, vector<1x8x8x4xf32>
    %89 = vector.shape_cast %88 : vector<1x8x8x4xf32> to vector<8x8x4xf32>
    %90 = vector.shape_cast %89 : vector<8x8x4xf32> to vector<64x4xf32>
    %91 = arith.truncf %90 : vector<64x4xf32> to vector<64x4xbf16>
    %c1_70 = arith.constant 1 : index
    %c3_71 = arith.constant 3 : index
    %c0_72 = arith.constant 0 : index
    %c0_73 = arith.constant 0 : index
    %92 = vector.load %arg3[%c1_70, %c3_71, %c0_72, %c0_73] : memref<4x4x4x8xbf16, #tpu.memory_space<vmem>>, vector<1x1x4x8xbf16>
    %93 = vector.shape_cast %92 : vector<1x1x4x8xbf16> to vector<4x8xbf16>
    %cst_74 = arith.constant dense<0.000000e+00> : vector<64x8xf32>
    %94 = tpu.matmul %91, %93, %cst_74 {dimension_numbers = #tpu.dot_dimension_numbers<[1], [0], [0], [1], [0, 0, 1, 1], [], []>} : vector<64x4xbf16>, vector<4x8xbf16>, vector<64x8xf32> -> vector<64x8xf32>
    %95 = arith.addf %85, %94 : vector<64x8xf32>
    %96 = arith.truncf %95 : vector<64x8xf32> to vector<64x8xbf16>
    %c0_75 = arith.constant 0 : index
    %c1_76 = arith.constant 1 : index
    %c0_77 = arith.constant 0 : index
    %c0_78 = arith.constant 0 : index
    %97 = vector.load %arg4[%c0_75, %c1_76, %c0_77, %c0_78] : memref<1x4x64x8xbf16, #tpu.memory_space<vmem>>, vector<1x1x64x8xbf16>
    %98 = vector.shape_cast %97 : vector<1x1x64x8xbf16> to vector<64x8xbf16>
    %99 = vector.shape_cast %96 : vector<64x8xbf16> to vector<1x1x64x8xbf16>
    tpu.vector_store %arg4[%c0_75, %c1_76, %c0_77, %c0_78], %99 {strides = array<i32>} : memref<1x4x64x8xbf16, #tpu.memory_space<vmem>>, vector<1x1x64x8xbf16>,
    %cst_79 = arith.constant dense<0.000000e+00> : vector<8xf32>
    %100 = vector.multi_reduction <add>, %95, %cst_79 [0] : vector<64x8xf32> to vector<8xf32>
    %101 = vector.shape_cast %100 : vector<8xf32> to vector<1x8xf32>
    %102 = arith.addf %50, %101 : vector<1x8xf32>
    %103 = arith.mulf %95, %95 : vector<64x8xf32>
    %cst_80 = arith.constant dense<0.000000e+00> : vector<8xf32>
    %104 = vector.multi_reduction <add>, %103, %cst_80 [0] : vector<64x8xf32> to vector<8xf32>
    %105 = vector.shape_cast %104 : vector<8xf32> to vector<1x8xf32>
    %106 = arith.addf %54, %105 : vector<1x8xf32>
    %cst_81 = arith.constant 0.000000e+00 : f32
    %107 = vector.broadcast %cst_81 : f32 to vector<64x8xf32>
    %c2_i32 = arith.constant 2 : i32
    %108 = arith.addi %0, %c2_i32 : i32
    %c0_82 = arith.constant 0 : index
    %109 = arith.index_cast %108 : i32 to index
    %c1_83 = arith.constant 1 : index
    %c0_84 = arith.constant 0 : index
    %110 = vector.load %arg2[%c0_82, %109, %c1_83, %c0_84] : memref<1x10x10x4xf32, #tpu.memory_space<vmem>>, vector<1x8x8x4xf32>
    %111 = vector.shape_cast %110 : vector<1x8x8x4xf32> to vector<8x8x4xf32>
    %112 = vector.shape_cast %111 : vector<8x8x4xf32> to vector<64x4xf32>
    %113 = arith.truncf %112 : vector<64x4xf32> to vector<64x4xbf16>
    %c2_85 = arith.constant 2 : index
    %c0_86 = arith.constant 0 : index
    %c0_87 = arith.constant 0 : index
    %c0_88 = arith.constant 0 : index
    %114 = vector.load %arg3[%c2_85, %c0_86, %c0_87, %c0_88] : memref<4x4x4x8xbf16, #tpu.memory_space<vmem>>, vector<1x1x4x8xbf16>
    %115 = vector.shape_cast %114 : vector<1x1x4x8xbf16> to vector<4x8xbf16>
    %cst_89 = arith.constant dense<0.000000e+00> : vector<64x8xf32>
    %116 = tpu.matmul %113, %115, %cst_89 {dimension_numbers = #tpu.dot_dimension_numbers<[1], [0], [0], [1], [0, 0, 1, 1], [], []>} : vector<64x4xbf16>, vector<4x8xbf16>, vector<64x8xf32> -> vector<64x8xf32>
    %117 = arith.addf %107, %116 : vector<64x8xf32>
    %c2_i32_90 = arith.constant 2 : i32
    %118 = arith.addi %0, %c2_i32_90 : i32
    %c0_91 = arith.constant 0 : index
    %119 = arith.index_cast %118 : i32 to index
    %c0_92 = arith.constant 0 : index
    %c0_93 = arith.constant 0 : index
    %120 = vector.load %arg2[%c0_91, %119, %c0_92, %c0_93] : memref<1x10x10x4xf32, #tpu.memory_space<vmem>>, vector<1x8x8x4xf32>
    %121 = vector.shape_cast %120 : vector<1x8x8x4xf32> to vector<8x8x4xf32>
    %122 = vector.shape_cast %121 : vector<8x8x4xf32> to vector<64x4xf32>
    %123 = arith.truncf %122 : vector<64x4xf32> to vector<64x4xbf16>
    %c2_94 = arith.constant 2 : index
    %c1_95 = arith.constant 1 : index
    %c0_96 = arith.constant 0 : index
    %c0_97 = arith.constant 0 : index
    %124 = vector.load %arg3[%c2_94, %c1_95, %c0_96, %c0_97] : memref<4x4x4x8xbf16, #tpu.memory_space<vmem>>, vector<1x1x4x8xbf16>
    %125 = vector.shape_cast %124 : vector<1x1x4x8xbf16> to vector<4x8xbf16>
    %cst_98 = arith.constant dense<0.000000e+00> : vector<64x8xf32>
    %126 = tpu.matmul %123, %125, %cst_98 {dimension_numbers = #tpu.dot_dimension_numbers<[1], [0], [0], [1], [0, 0, 1, 1], [], []>} : vector<64x4xbf16>, vector<4x8xbf16>, vector<64x8xf32> -> vector<64x8xf32>
    %127 = arith.addf %117, %126 : vector<64x8xf32>
    %c1_i32_99 = arith.constant 1 : i32
    %128 = arith.addi %0, %c1_i32_99 : i32
    %c0_100 = arith.constant 0 : index
    %129 = arith.index_cast %128 : i32 to index
    %c1_101 = arith.constant 1 : index
    %c0_102 = arith.constant 0 : index
    %130 = vector.load %arg2[%c0_100, %129, %c1_101, %c0_102] : memref<1x10x10x4xf32, #tpu.memory_space<vmem>>, vector<1x8x8x4xf32>
    %131 = vector.shape_cast %130 : vector<1x8x8x4xf32> to vector<8x8x4xf32>
    %132 = vector.shape_cast %131 : vector<8x8x4xf32> to vector<64x4xf32>
    %133 = arith.truncf %132 : vector<64x4xf32> to vector<64x4xbf16>
    %c2_103 = arith.constant 2 : index
    %c2_104 = arith.constant 2 : index
    %c0_105 = arith.constant 0 : index
    %c0_106 = arith.constant 0 : index
    %134 = vector.load %arg3[%c2_103, %c2_104, %c0_105, %c0_106] : memref<4x4x4x8xbf16, #tpu.memory_space<vmem>>, vector<1x1x4x8xbf16>
    %135 = vector.shape_cast %134 : vector<1x1x4x8xbf16> to vector<4x8xbf16>
    %cst_107 = arith.constant dense<0.000000e+00> : vector<64x8xf32>
    %136 = tpu.matmul %133, %135, %cst_107 {dimension_numbers = #tpu.dot_dimension_numbers<[1], [0], [0], [1], [0, 0, 1, 1], [], []>} : vector<64x4xbf16>, vector<4x8xbf16>, vector<64x8xf32> -> vector<64x8xf32>
    %137 = arith.addf %127, %136 : vector<64x8xf32>
    %c1_i32_108 = arith.constant 1 : i32
    %138 = arith.addi %0, %c1_i32_108 : i32
    %c0_109 = arith.constant 0 : index
    %139 = arith.index_cast %138 : i32 to index
    %c0_110 = arith.constant 0 : index
    %c0_111 = arith.constant 0 : index
    %140 = vector.load %arg2[%c0_109, %139, %c0_110, %c0_111] : memref<1x10x10x4xf32, #tpu.memory_space<vmem>>, vector<1x8x8x4xf32>
    %141 = vector.shape_cast %140 : vector<1x8x8x4xf32> to vector<8x8x4xf32>
    %142 = vector.shape_cast %141 : vector<8x8x4xf32> to vector<64x4xf32>
    %143 = arith.truncf %142 : vector<64x4xf32> to vector<64x4xbf16>
    %c2_112 = arith.constant 2 : index
    %c3_113 = arith.constant 3 : index
    %c0_114 = arith.constant 0 : index
    %c0_115 = arith.constant 0 : index
    %144 = vector.load %arg3[%c2_112, %c3_113, %c0_114, %c0_115] : memref<4x4x4x8xbf16, #tpu.memory_space<vmem>>, vector<1x1x4x8xbf16>
    %145 = vector.shape_cast %144 : vector<1x1x4x8xbf16> to vector<4x8xbf16>
    %cst_116 = arith.constant dense<0.000000e+00> : vector<64x8xf32>
    %146 = tpu.matmul %143, %145, %cst_116 {dimension_numbers = #tpu.dot_dimension_numbers<[1], [0], [0], [1], [0, 0, 1, 1], [], []>} : vector<64x4xbf16>, vector<4x8xbf16>, vector<64x8xf32> -> vector<64x8xf32>
    %147 = arith.addf %137, %146 : vector<64x8xf32>
    %148 = arith.truncf %147 : vector<64x8xf32> to vector<64x8xbf16>
    %c0_117 = arith.constant 0 : index
    %c2_118 = arith.constant 2 : index
    %c0_119 = arith.constant 0 : index
    %c0_120 = arith.constant 0 : index
    %149 = vector.load %arg4[%c0_117, %c2_118, %c0_119, %c0_120] : memref<1x4x64x8xbf16, #tpu.memory_space<vmem>>, vector<1x1x64x8xbf16>
    %150 = vector.shape_cast %149 : vector<1x1x64x8xbf16> to vector<64x8xbf16>
    %151 = vector.shape_cast %148 : vector<64x8xbf16> to vector<1x1x64x8xbf16>
    tpu.vector_store %arg4[%c0_117, %c2_118, %c0_119, %c0_120], %151 {strides = array<i32>} : memref<1x4x64x8xbf16, #tpu.memory_space<vmem>>, vector<1x1x64x8xbf16>,
    %cst_121 = arith.constant dense<0.000000e+00> : vector<8xf32>
    %152 = vector.multi_reduction <add>, %147, %cst_121 [0] : vector<64x8xf32> to vector<8xf32>
    %153 = vector.shape_cast %152 : vector<8xf32> to vector<1x8xf32>
    %154 = arith.addf %102, %153 : vector<1x8xf32>
    %155 = arith.mulf %147, %147 : vector<64x8xf32>
    %cst_122 = arith.constant dense<0.000000e+00> : vector<8xf32>
    %156 = vector.multi_reduction <add>, %155, %cst_122 [0] : vector<64x8xf32> to vector<8xf32>
    %157 = vector.shape_cast %156 : vector<8xf32> to vector<1x8xf32>
    %158 = arith.addf %106, %157 : vector<1x8xf32>
    %cst_123 = arith.constant 0.000000e+00 : f32
    %159 = vector.broadcast %cst_123 : f32 to vector<64x8xf32>
    %c2_i32_124 = arith.constant 2 : i32
    %160 = arith.addi %0, %c2_i32_124 : i32
    %c0_125 = arith.constant 0 : index
    %161 = arith.index_cast %160 : i32 to index
    %c2_126 = arith.constant 2 : index
    %c0_127 = arith.constant 0 : index
    %162 = vector.load %arg2[%c0_125, %161, %c2_126, %c0_127] : memref<1x10x10x4xf32, #tpu.memory_space<vmem>>, vector<1x8x8x4xf32>
    %163 = vector.shape_cast %162 : vector<1x8x8x4xf32> to vector<8x8x4xf32>
    %164 = vector.shape_cast %163 : vector<8x8x4xf32> to vector<64x4xf32>
    %165 = arith.truncf %164 : vector<64x4xf32> to vector<64x4xbf16>
    %c3_128 = arith.constant 3 : index
    %c0_129 = arith.constant 0 : index
    %c0_130 = arith.constant 0 : index
    %c0_131 = arith.constant 0 : index
    %166 = vector.load %arg3[%c3_128, %c0_129, %c0_130, %c0_131] : memref<4x4x4x8xbf16, #tpu.memory_space<vmem>>, vector<1x1x4x8xbf16>
    %167 = vector.shape_cast %166 : vector<1x1x4x8xbf16> to vector<4x8xbf16>
    %cst_132 = arith.constant dense<0.000000e+00> : vector<64x8xf32>
    %168 = tpu.matmul %165, %167, %cst_132 {dimension_numbers = #tpu.dot_dimension_numbers<[1], [0], [0], [1], [0, 0, 1, 1], [], []>} : vector<64x4xbf16>, vector<4x8xbf16>, vector<64x8xf32> -> vector<64x8xf32>
    %169 = arith.addf %159, %168 : vector<64x8xf32>
    %c2_i32_133 = arith.constant 2 : i32
    %170 = arith.addi %0, %c2_i32_133 : i32
    %c0_134 = arith.constant 0 : index
    %171 = arith.index_cast %170 : i32 to index
    %c1_135 = arith.constant 1 : index
    %c0_136 = arith.constant 0 : index
    %172 = vector.load %arg2[%c0_134, %171, %c1_135, %c0_136] : memref<1x10x10x4xf32, #tpu.memory_space<vmem>>, vector<1x8x8x4xf32>
    %173 = vector.shape_cast %172 : vector<1x8x8x4xf32> to vector<8x8x4xf32>
    %174 = vector.shape_cast %173 : vector<8x8x4xf32> to vector<64x4xf32>
    %175 = arith.truncf %174 : vector<64x4xf32> to vector<64x4xbf16>
    %c3_137 = arith.constant 3 : index
    %c1_138 = arith.constant 1 : index
    %c0_139 = arith.constant 0 : index
    %c0_140 = arith.constant 0 : index
    %176 = vector.load %arg3[%c3_137, %c1_138, %c0_139, %c0_140] : memref<4x4x4x8xbf16, #tpu.memory_space<vmem>>, vector<1x1x4x8xbf16>
    %177 = vector.shape_cast %176 : vector<1x1x4x8xbf16> to vector<4x8xbf16>
    %cst_141 = arith.constant dense<0.000000e+00> : vector<64x8xf32>
    %178 = tpu.matmul %175, %177, %cst_141 {dimension_numbers = #tpu.dot_dimension_numbers<[1], [0], [0], [1], [0, 0, 1, 1], [], []>} : vector<64x4xbf16>, vector<4x8xbf16>, vector<64x8xf32> -> vector<64x8xf32>
    %179 = arith.addf %169, %178 : vector<64x8xf32>
    %c1_i32_142 = arith.constant 1 : i32
    %180 = arith.addi %0, %c1_i32_142 : i32
    %c0_143 = arith.constant 0 : index
    %181 = arith.index_cast %180 : i32 to index
    %c2_144 = arith.constant 2 : index
    %c0_145 = arith.constant 0 : index
    %182 = vector.load %arg2[%c0_143, %181, %c2_144, %c0_145] : memref<1x10x10x4xf32, #tpu.memory_space<vmem>>, vector<1x8x8x4xf32>
    %183 = vector.shape_cast %182 : vector<1x8x8x4xf32> to vector<8x8x4xf32>
    %184 = vector.shape_cast %183 : vector<8x8x4xf32> to vector<64x4xf32>
    %185 = arith.truncf %184 : vector<64x4xf32> to vector<64x4xbf16>
    %c3_146 = arith.constant 3 : index
    %c2_147 = arith.constant 2 : index
    %c0_148 = arith.constant 0 : index
    %c0_149 = arith.constant 0 : index
    %186 = vector.load %arg3[%c3_146, %c2_147, %c0_148, %c0_149] : memref<4x4x4x8xbf16, #tpu.memory_space<vmem>>, vector<1x1x4x8xbf16>
    %187 = vector.shape_cast %186 : vector<1x1x4x8xbf16> to vector<4x8xbf16>
    %cst_150 = arith.constant dense<0.000000e+00> : vector<64x8xf32>
    %188 = tpu.matmul %185, %187, %cst_150 {dimension_numbers = #tpu.dot_dimension_numbers<[1], [0], [0], [1], [0, 0, 1, 1], [], []>} : vector<64x4xbf16>, vector<4x8xbf16>, vector<64x8xf32> -> vector<64x8xf32>
    %189 = arith.addf %179, %188 : vector<64x8xf32>
    %c1_i32_151 = arith.constant 1 : i32
    %190 = arith.addi %0, %c1_i32_151 : i32
    %c0_152 = arith.constant 0 : index
    %191 = arith.index_cast %190 : i32 to index
    %c1_153 = arith.constant 1 : index
    %c0_154 = arith.constant 0 : index
    %192 = vector.load %arg2[%c0_152, %191, %c1_153, %c0_154] : memref<1x10x10x4xf32, #tpu.memory_space<vmem>>, vector<1x8x8x4xf32>
    %193 = vector.shape_cast %192 : vector<1x8x8x4xf32> to vector<8x8x4xf32>
    %194 = vector.shape_cast %193 : vector<8x8x4xf32> to vector<64x4xf32>
    %195 = arith.truncf %194 : vector<64x4xf32> to vector<64x4xbf16>
    %c3_155 = arith.constant 3 : index
    %c3_156 = arith.constant 3 : index
    %c0_157 = arith.constant 0 : index
    %c0_158 = arith.constant 0 : index
    %196 = vector.load %arg3[%c3_155, %c3_156, %c0_157, %c0_158] : memref<4x4x4x8xbf16, #tpu.memory_space<vmem>>, vector<1x1x4x8xbf16>
    %197 = vector.shape_cast %196 : vector<1x1x4x8xbf16> to vector<4x8xbf16>
    %cst_159 = arith.constant dense<0.000000e+00> : vector<64x8xf32>
    %198 = tpu.matmul %195, %197, %cst_159 {dimension_numbers = #tpu.dot_dimension_numbers<[1], [0], [0], [1], [0, 0, 1, 1], [], []>} : vector<64x4xbf16>, vector<4x8xbf16>, vector<64x8xf32> -> vector<64x8xf32>
    %199 = arith.addf %189, %198 : vector<64x8xf32>
    %200 = arith.truncf %199 : vector<64x8xf32> to vector<64x8xbf16>
    %c0_160 = arith.constant 0 : index
    %c3_161 = arith.constant 3 : index
    %c0_162 = arith.constant 0 : index
    %c0_163 = arith.constant 0 : index
    %201 = vector.load %arg4[%c0_160, %c3_161, %c0_162, %c0_163] : memref<1x4x64x8xbf16, #tpu.memory_space<vmem>>, vector<1x1x64x8xbf16>
    %202 = vector.shape_cast %201 : vector<1x1x64x8xbf16> to vector<64x8xbf16>
    %203 = vector.shape_cast %200 : vector<64x8xbf16> to vector<1x1x64x8xbf16>
    tpu.vector_store %arg4[%c0_160, %c3_161, %c0_162, %c0_163], %203 {strides = array<i32>} : memref<1x4x64x8xbf16, #tpu.memory_space<vmem>>, vector<1x1x64x8xbf16>,
    %cst_164 = arith.constant dense<0.000000e+00> : vector<8xf32>
    %204 = vector.multi_reduction <add>, %199, %cst_164 [0] : vector<64x8xf32> to vector<8xf32>
    %205 = vector.shape_cast %204 : vector<8xf32> to vector<1x8xf32>
    %206 = arith.addf %154, %205 : vector<1x8xf32>
    %207 = arith.mulf %199, %199 : vector<64x8xf32>
    %cst_165 = arith.constant dense<0.000000e+00> : vector<8xf32>
    %208 = vector.multi_reduction <add>, %207, %cst_165 [0] : vector<64x8xf32> to vector<8xf32>
    %209 = vector.shape_cast %208 : vector<8xf32> to vector<1x8xf32>
    %210 = arith.addf %158, %209 : vector<1x8xf32>
    %c0_166 = arith.constant 0 : index
    %c0_167 = arith.constant 0 : index
    %c0_168 = arith.constant 0 : index
    %c0_169 = arith.constant 0 : index
    %211 = vector.load %arg5[%c0_166, %c0_167, %c0_168, %c0_169] : memref<1x1x2x8xf32, #tpu.memory_space<vmem>>, vector<1x1x1x8xf32>
    %212 = vector.shape_cast %211 : vector<1x1x1x8xf32> to vector<1x8xf32>
    %213 = vector.shape_cast %206 : vector<1x8xf32> to vector<1x1x1x8xf32>
    tpu.vector_store %arg5[%c0_166, %c0_167, %c0_168, %c0_169], %213 {strides = array<i32>} : memref<1x1x2x8xf32, #tpu.memory_space<vmem>>, vector<1x1x1x8xf32>,
    %c0_170 = arith.constant 0 : index
    %c0_171 = arith.constant 0 : index
    %c1_172 = arith.constant 1 : index
    %c0_173 = arith.constant 0 : index
    %214 = vector.load %arg5[%c0_170, %c0_171, %c1_172, %c0_173] : memref<1x1x2x8xf32, #tpu.memory_space<vmem>>, vector<1x1x1x8xf32>
    %215 = vector.shape_cast %214 : vector<1x1x1x8xf32> to vector<1x8xf32>
    %216 = vector.shape_cast %210 : vector<1x8xf32> to vector<1x1x1x8xf32>
    tpu.vector_store %arg5[%c0_170, %c0_171, %c1_172, %c0_173], %216 {strides = array<i32>} : memref<1x1x2x8xf32, #tpu.memory_space<vmem>>, vector<1x1x1x8xf32>,
    return
  }
  func.func @transform_0(%arg0: i32, %arg1: i32) -> (i32, i32, i32, i32) {
    %c0_i32 = arith.constant 0 : i32
    %c0_i32_0 = arith.constant 0 : i32
    %c0_i32_1 = arith.constant 0 : i32
    %c0_i32_2 = arith.constant 0 : i32
    return %arg0, %c0_i32, %c0_i32_0, %c0_i32_1 : i32, i32, i32, i32
  }
  func.func @transform_1(%arg0: i32, %arg1: i32) -> (i32, i32, i32, i32) {
    %c0_i32 = arith.constant 0 : i32
    %c0_i32_0 = arith.constant 0 : i32
    %c0_i32_1 = arith.constant 0 : i32
    %c0_i32_2 = arith.constant 0 : i32
    %c0_i32_3 = arith.constant 0 : i32
    return %c0_i32, %c0_i32_0, %c0_i32_1, %c0_i32_2 : i32, i32, i32, i32
  }
  func.func @transform_2(%arg0: i32, %arg1: i32) -> (i32, i32, i32, i32) {
    %c0_i32 = arith.constant 0 : i32
    %c0_i32_0 = arith.constant 0 : i32
    %c0_i32_1 = arith.constant 0 : i32
    return %arg0, %c0_i32, %arg1, %c0_i32_0 : i32, i32, i32, i32
  }
  func.func @transform_3(%arg0: i32, %arg1: i32) -> (i32, i32, i32, i32) {
    %c0_i32 = arith.constant 0 : i32
    %c0_i32_0 = arith.constant 0 : i32
    %c0_i32_1 = arith.constant 0 : i32
    return %arg0, %arg1, %c0_i32, %c0_i32_0 : i32, i32, i32, i32
  }
}

module attributes {stable_mosaic.version = 11 : i64} {
  func.func @_bn_lrelu_kernel(%arg0: i32, %arg1: memref<512x8xbf16, #tpu.memory_space<vmem>>, %arg2: memref<1x8xf32, #tpu.memory_space<vmem>>, %arg3: memref<1x8xf32, #tpu.memory_space<vmem>>, %arg4: memref<512x8xf32, #tpu.memory_space<vmem>>) attributes {dimension_semantics = [#tpu.dimension_semantics<parallel>], iteration_bounds = array<i64: 1>, scalar_prefetch = 0 : i64, scratch_operands = 0 : i64, tpu.core_type = #tpu.core_type<tc>, window_params = [{transform_indices = @transform_0, window_bounds = array<i64: 512, 8>}, {pipeline_mode = #tpu.pipeline_mode<synchronous>, transform_indices = @transform_1, window_bounds = array<i64: 1, 8>}, {pipeline_mode = #tpu.pipeline_mode<synchronous>, transform_indices = @transform_2, window_bounds = array<i64: 1, 8>}, {transform_indices = @transform_3, window_bounds = array<i64: 512, 8>}]} {
    %c0 = arith.constant 0 : index
    %c0_0 = arith.constant 0 : index
    %0 = vector.load %arg1[%c0, %c0_0] : memref<512x8xbf16, #tpu.memory_space<vmem>>, vector<512x8xbf16>
    %1 = arith.extf %0 : vector<512x8xbf16> to vector<512x8xf32>
    %c0_1 = arith.constant 0 : index
    %c0_2 = arith.constant 0 : index
    %2 = vector.load %arg2[%c0_1, %c0_2] : memref<1x8xf32, #tpu.memory_space<vmem>>, vector<1x8xf32>
    %3 = vector.broadcast %2 : vector<1x8xf32> to vector<512x8xf32>
    %4 = arith.mulf %1, %3 : vector<512x8xf32>
    %c0_3 = arith.constant 0 : index
    %c0_4 = arith.constant 0 : index
    %5 = vector.load %arg3[%c0_3, %c0_4] : memref<1x8xf32, #tpu.memory_space<vmem>>, vector<1x8xf32>
    %6 = vector.broadcast %5 : vector<1x8xf32> to vector<512x8xf32>
    %7 = arith.addf %4, %6 : vector<512x8xf32>
    %cst = arith.constant 0.000000e+00 : f32
    %8 = vector.broadcast %cst : f32 to vector<512x8xf32>
    %9 = arith.cmpf oge, %7, %8 : vector<512x8xf32>
    %cst_5 = arith.constant 0.00999999977 : f32
    %10 = vector.broadcast %cst_5 : f32 to vector<512x8xf32>
    %11 = arith.mulf %10, %7 : vector<512x8xf32>
    %12 = arith.select %9, %7, %11 : vector<512x8xi1>, vector<512x8xf32>
    %c0_6 = arith.constant 0 : index
    %c0_7 = arith.constant 0 : index
    %13 = vector.load %arg4[%c0_6, %c0_7] : memref<512x8xf32, #tpu.memory_space<vmem>>, vector<512x8xf32>
    tpu.vector_store %arg4[%c0_6, %c0_7], %12 {strides = array<i32>} : memref<512x8xf32, #tpu.memory_space<vmem>>, vector<512x8xf32>,
    return
  }
  func.func @transform_0(%arg0: i32) -> (i32, i32) {
    %c0_i32 = arith.constant 0 : i32
    %c0_i32_0 = arith.constant 0 : i32
    return %arg0, %c0_i32 : i32, i32
  }
  func.func @transform_1(%arg0: i32) -> (i32, i32) {
    %c0_i32 = arith.constant 0 : i32
    %c0_i32_0 = arith.constant 0 : i32
    %c0_i32_1 = arith.constant 0 : i32
    return %c0_i32, %c0_i32_0 : i32, i32
  }
  func.func @transform_2(%arg0: i32) -> (i32, i32) {
    %c0_i32 = arith.constant 0 : i32
    %c0_i32_0 = arith.constant 0 : i32
    %c0_i32_1 = arith.constant 0 : i32
    return %c0_i32, %c0_i32_0 : i32, i32
  }
  func.func @transform_3(%arg0: i32) -> (i32, i32) {
    %c0_i32 = arith.constant 0 : i32
    %c0_i32_0 = arith.constant 0 : i32
    return %arg0, %c0_i32 : i32, i32
  }
}

</mosaic_0001>

<bundles_post_ra>
// kernel: basic_convT_forward.3
= control target key start
LH: loop header
LB: loop body
LE: loop exit
PB: predicated region body
PF: predicated region fallthrough
CT: control target
= control target key end

     0   :  { %vm476_vm0 = vcmask 64512   ;;  %s1216_s0 = inlined_call_operand.vmem [shape: bf16[512,8], index: 0, kind: input, shape index: {}]   ;;  %s1217_s1 = inlined_call_operand.vmem [shape: f32[1,8], index: 1, kind: input, shape index: {}]   ;;  %s1218_s2 = inlined_call_operand.vmem [shape: f32[1,8], index: 2, kind: input, shape index: {}]   ;;  %s1219_s3 = inlined_call_operand.vmem [shape: f32[512,8], index: 3, kind: output, shape index: {}]  }
   0x1   :  { %v548_v0 = vld [vmem:[%s1216_s0] sm:$0xff]   ;;  %v675_v4 = vld [vmem:[%s1216_s0 + $0x8] sm:$0xff]   ;;  %v676_v5 = vld [vmem:[%s1216_s0 + $0x10] sm:$0xff]  }
   0x2   :  { %v732_v1 = vld [vmem:[%s1217_s1] ss:$0 sm:$0xff]  ;;  %v549_v2 = vunpack.c.l.bf16 %v548_v0  ;;  %v550_v3 = vunpack.c.h.bf16 %v548_v0  ;;  %v677_v6 = vld [vmem:[%s1216_s0 + $0x18] sm:$0xff]   ;;  %v553_v8 = vunpack.c.l.bf16 %v675_v4  ;;  %v554_v9 = vunpack.c.h.bf16 %v675_v4  ;;  %v679_v36 = vld [vmem:[%s1216_s0 + $0x28] sm:$0xff]  }
   0x3   :  { %v746_v7 = vld [vmem:[%s1218_s2] ss:$0 sm:$0xff]  ;;  %v557_v10 = vunpack.c.l.bf16 %v676_v5  ;;  %v558_v11 = vunpack.c.h.bf16 %v676_v5  ;;  %v561_v14 = vunpack.c.l.bf16 %v677_v6  ;;  %v562_v15 = vunpack.c.h.bf16 %v677_v6  ;;  %v680_v48 = vld [vmem:[%s1216_s0 + $0x30] sm:$0xff]   ;;  %v681_v55 = vld [vmem:[%s1216_s0 + $0x38] sm:$0xff]  }
   0x4   :  { %v149_v12 = vmul.f32 %v549_v2, %v732_v1  ;;  %v150_v13 = vmul.f32 %v550_v3, %v732_v1  ;;  %v151_v16 = vmul.f32 %v553_v8, %v732_v1  ;;  %v152_v17 = vmul.f32 %v554_v9, %v732_v1  ;;  %v678_v28 = vld [vmem:[%s1216_s0 + $0x20] sm:$0xff]  }
   0x5   :  { %v153_v18 = vmul.f32 %v557_v10, %v732_v1  ;;  %v154_v19 = vmul.f32 %v558_v11, %v732_v1  ;;  %v155_v22 = vmul.f32 %v561_v14, %v732_v1  ;;  %v156_v23 = vmul.f32 %v562_v15, %v732_v1  ;;  %v682_v14 = vld [vmem:[%s1216_s0 + $0x40] sm:$0xff]  }
   0x6   :  { %v220_v20 = vadd.f32 %v746_v7, %v149_v12  ;;  %v221_v21 = vadd.f32 %v746_v7, %v150_v13  ;;  %v222_v24 = vadd.f32 %v746_v7, %v151_v16  ;;  %v223_v25 = vadd.f32 %v746_v7, %v152_v17 }
   0x7   :  { %v224_v26 = vadd.f32 %v746_v7, %v153_v18  ;;  %v225_v27 = vadd.f32 %v746_v7, %v154_v19  ;;  %v226_v41 = vadd.f32 %v746_v7, %v155_v22  ;;  %v227_v42 = vadd.f32 %v746_v7, %v156_v23  ;;  %v683_v19 = vld [vmem:[%s1216_s0 + $0x48] sm:$0xff]  }
   0x8   :  { %vm284_vm1 = vcmp.ge.f32.partialorder %v220_v20, 0.0  ;;  %v348_v29 = vmul.f32 0.01, %v220_v20  ;;  %vm285_vm2 = vcmp.ge.f32.partialorder %v221_v21, 0.0  ;;  %v349_v30 = vmul.f32 0.01, %v221_v21 }
   0x9   :  { %vm286_vm3 = vcmp.ge.f32.partialorder %v222_v24, 0.0  ;;  %v350_v31 = vmul.f32 0.01, %v222_v24  ;;  %vm287_vm4 = vcmp.ge.f32.partialorder %v223_v25, 0.0  ;;  %v351_v32 = vmul.f32 0.01, %v223_v25 }
   0xa   :  { %v412_v33 = vsel %vm284_vm1, %v220_v20, %v348_v29  ;;  %v413_v34 = vsel %vm285_vm2, %v221_v21, %v349_v30  ;;  %vm288_vm5 = vcmp.ge.f32.partialorder %v224_v26, 0.0  ;;  %v352_v35 = vmul.f32 0.01, %v224_v26  ;;  %v684_v30 = vld [vmem:[%s1216_s0 + $0x50] sm:$0xff]  }
   0xb   :  { %477 = vst.msk [vmem:[%s1219_s3] sm:$0xff] %vm476_vm0, %v412_v33  ;;  %478 = vst.msk [vmem:[%s1219_s3 + $0x8] sm:$0xff] %vm476_vm0, %v413_v34  ;;  %v414_v37 = vsel %vm286_vm3, %v222_v24, %v350_v31  ;;  %v415_v38 = vsel %vm287_vm4, %v223_v25, %v351_v32  ;;  %vm289_vm6 = vcmp.ge.f32.partialorder %v225_v27, 0.0  ;;  %v353_v39 = vmul.f32 0.01, %v225_v27 }
   0xc   :  { %479 = vst.msk [vmem:[%s1219_s3 + $0x10] sm:$0xff] %vm476_vm0, %v414_v37  ;;  %480 = vst.msk [vmem:[%s1219_s3 + $0x18] sm:$0xff] %vm476_vm0, %v415_v38  ;;  %v416_v40 = vsel %vm288_vm5, %v224_v26, %v352_v35  ;;  %v565_v43 = vunpack.c.l.bf16 %v678_v28  ;;  %v566_v45 = vunpack.c.h.bf16 %v678_v28  ;;  %v569_v46 = vunpack.c.l.bf16 %v679_v36  ;;  %v685_v37 = vld [vmem:[%s1216_s0 + $0x58] sm:$0xff]  }
   0xd   :  { %481 = vst.msk [vmem:[%s1219_s3 + $0x20] sm:$0xff] %vm476_vm0, %v416_v40  ;;  %v417_v44 = vsel %vm289_vm6, %v225_v27, %v353_v39  ;;  %v570_v47 = vunpack.c.h.bf16 %v679_v36  ;;  %vm290_vm7 = vcmp.ge.f32.partialorder %v226_v41, 0.0  ;;  %v354_v49 = vmul.f32 0.01, %v226_v41 }
   0xe   :  { %482 = vst.msk [vmem:[%s1219_s3 + $0x28] sm:$0xff] %vm476_vm0, %v417_v44  ;;  %vm291_vm8 = vcmp.ge.f32.partialorder %v227_v42, 0.0  ;;  %v355_v50 = vmul.f32 0.01, %v227_v42  ;;  %v157_v51 = vmul.f32 %v565_v43, %v732_v1  ;;  %v158_v52 = vmul.f32 %v566_v45, %v732_v1 }
   0xf   :  { %v159_v53 = vmul.f32 %v569_v46, %v732_v1  ;;  %v160_v54 = vmul.f32 %v570_v47, %v732_v1  ;;  %v418_v56 = vsel %vm290_vm7, %v226_v41, %v354_v49  ;;  %v573_v58 = vunpack.c.l.bf16 %v680_v48 }
  0x10   :  { %v419_v57 = vsel %vm291_vm8, %v227_v42, %v355_v50  ;;  %v574_v59 = vunpack.c.h.bf16 %v680_v48  ;;  %483 = vst.msk [vmem:[%s1219_s3 + $0x30] sm:$0xff] %vm476_vm0, %v418_v56  ;;  %v228_v60 = vadd.f32 %v746_v7, %v157_v51  ;;  %v229_v61 = vadd.f32 %v746_v7, %v158_v52 }
  0x11   :  { %484 = vst.msk [vmem:[%s1219_s3 + $0x38] sm:$0xff] %vm476_vm0, %v419_v57  ;;  %v230_v62 = vadd.f32 %v746_v7, %v159_v53  ;;  %v231_v63 = vadd.f32 %v746_v7, %v160_v54  ;;  %v161_v0 = vmul.f32 %v573_v58, %v732_v1  ;;  %v577_v3 = vunpack.c.l.bf16 %v681_v55  ;;  %v686_v58 = vld [vmem:[%s1216_s0 + $0x60] sm:$0xff]  }
  0x12   :  { %v162_v2 = vmul.f32 %v574_v59, %v732_v1  ;;  %v578_v4 = vunpack.c.h.bf16 %v681_v55  ;;  %vm292_vm9 = vcmp.ge.f32.partialorder %v228_v60, 0.0  ;;  %v356_v5 = vmul.f32 0.01, %v228_v60 }
  0x13   :  { %vm293_vm10 = vcmp.ge.f32.partialorder %v229_v61, 0.0  ;;  %v357_v6 = vmul.f32 0.01, %v229_v61  ;;  %vm294_vm11 = vcmp.ge.f32.partialorder %v230_v62, 0.0  ;;  %v358_v8 = vmul.f32 0.01, %v230_v62 }
  0x14   :  { %vm295_vm12 = vcmp.ge.f32.partialorder %v231_v63, 0.0  ;;  %v359_v9 = vmul.f32 0.01, %v231_v63  ;;  %v420_v10 = vsel %vm292_vm9, %v228_v60, %v356_v5  ;;  %v232_v12 = vadd.f32 %v746_v7, %v161_v0 }
  0x15   :  { %v421_v11 = vsel %vm293_vm10, %v229_v61, %v357_v6  ;;  %v233_v13 = vadd.f32 %v746_v7, %v162_v2  ;;  %485 = vst.msk [vmem:[%s1219_s3 + $0x40] sm:$0xff] %vm476_vm0, %v420_v10  ;;  %v422_v15 = vsel %vm294_vm11, %v230_v62, %v358_v8  ;;  %v163_v17 = vmul.f32 %v577_v3, %v732_v1 }
  0x16   :  { %486 = vst.msk [vmem:[%s1219_s3 + $0x48] sm:$0xff] %vm476_vm0, %v421_v11  ;;  %v423_v16 = vsel %vm295_vm12, %v231_v63, %v359_v9  ;;  %v164_v18 = vmul.f32 %v578_v4, %v732_v1  ;;  %487 = vst.msk [vmem:[%s1219_s3 + $0x50] sm:$0xff] %vm476_vm0, %v422_v15  ;;  %vm296_vm13 = vcmp.ge.f32.partialorder %v232_v12, 0.0  ;;  %v360_v20 = vmul.f32 0.01, %v232_v12  ;;  %v687_v63 = vld [vmem:[%s1216_s0 + $0x68] sm:$0xff]  }
  0x17   :  { %488 = vst.msk [vmem:[%s1219_s3 + $0x58] sm:$0xff] %vm476_vm0, %v423_v16  ;;  %vm297_vm14 = vcmp.ge.f32.partialorder %v233_v13, 0.0  ;;  %v361_v21 = vmul.f32 0.01, %v233_v13  ;;  %v234_v22 = vadd.f32 %v746_v7, %v163_v17  ;;  %v581_v24 = vunpack.c.l.bf16 %v682_v14 }
  0x18   :  { %v235_v23 = vadd.f32 %v746_v7, %v164_v18  ;;  %v582_v25 = vunpack.c.h.bf16 %v682_v14  ;;  %v424_v26 = vsel %vm296_vm13, %v232_v12, %v360_v20  ;;  %v585_v28 = vunpack.c.l.bf16 %v683_v19  ;;  %v688_v12 = vld [vmem:[%s1216_s0 + $0x70] sm:$0xff]  }
  0x19   :  { %v425_v27 = vsel %vm297_vm14, %v233_v13, %v361_v21  ;;  %v586_v29 = vunpack.c.h.bf16 %v683_v19  ;;  %489 = vst.msk [vmem:[%s1219_s3 + $0x60] sm:$0xff] %vm476_vm0, %v424_v26  ;;  %vm298_vm15 = vcmp.ge.f32.partialorder %v234_v22, 0.0  ;;  %v362_v31 = vmul.f32 0.01, %v234_v22  ;;  %v689_v19 = vld [vmem:[%s1216_s0 + $0x78] sm:$0xff]  }
  0x1a   :  { %490 = vst.msk [vmem:[%s1219_s3 + $0x68] sm:$0xff] %vm476_vm0, %v425_v27  ;;  %vm299_vm1 = vcmp.ge.f32.partialorder %v235_v23, 0.0  ;;  %v363_v32 = vmul.f32 0.01, %v235_v23  ;;  %v165_v33 = vmul.f32 %v581_v24, %v732_v1  ;;  %v166_v34 = vmul.f32 %v582_v25, %v732_v1 }
  0x1b   :  { %v167_v35 = vmul.f32 %v585_v28, %v732_v1  ;;  %v168_v36 = vmul.f32 %v586_v29, %v732_v1  ;;  %v426_v38 = vsel %vm298_vm15, %v234_v22, %v362_v31  ;;  %v589_v40 = vunpack.c.l.bf16 %v684_v30 }
  0x1c   :  { %v427_v39 = vsel %vm299_vm1, %v235_v23, %v363_v32  ;;  %v590_v41 = vunpack.c.h.bf16 %v684_v30  ;;  %491 = vst.msk [vmem:[%s1219_s3 + $0x70] sm:$0xff] %vm476_vm0, %v426_v38  ;;  %v236_v42 = vadd.f32 %v746_v7, %v165_v33  ;;  %v237_v43 = vadd.f32 %v746_v7, %v166_v34 }
  0x1d   :  { %492 = vst.msk [vmem:[%s1219_s3 + $0x78] sm:$0xff] %vm476_vm0, %v427_v39  ;;  %v238_v44 = vadd.f32 %v746_v7, %v167_v35  ;;  %v239_v45 = vadd.f32 %v746_v7, %v168_v36  ;;  %v169_v46 = vmul.f32 %v589_v40, %v732_v1  ;;  %v593_v48 = vunpack.c.l.bf16 %v685_v37  ;;  %v690_v40 = vld [vmem:[%s1216_s0 + $0x80] sm:$0xff]  }
  0x1e   :  { %v170_v47 = vmul.f32 %v590_v41, %v732_v1  ;;  %v594_v49 = vunpack.c.h.bf16 %v685_v37  ;;  %vm300_vm2 = vcmp.ge.f32.partialorder %v236_v42, 0.0  ;;  %v364_v50 = vmul.f32 0.01, %v236_v42 }
  0x1f   :  { %vm301_vm3 = vcmp.ge.f32.partialorder %v237_v43, 0.0  ;;  %v365_v51 = vmul.f32 0.01, %v237_v43  ;;  %vm302_vm4 = vcmp.ge.f32.partialorder %v238_v44, 0.0  ;;  %v366_v52 = vmul.f32 0.01, %v238_v44 }
  0x20   :  { %vm303_vm5 = vcmp.ge.f32.partialorder %v239_v45, 0.0  ;;  %v367_v53 = vmul.f32 0.01, %v239_v45  ;;  %v428_v54 = vsel %vm300_vm2, %v236_v42, %v364_v50  ;;  %v240_v56 = vadd.f32 %v746_v7, %v169_v46 }
  0x21   :  { %v429_v55 = vsel %vm301_vm3, %v237_v43, %v365_v51  ;;  %v241_v57 = vadd.f32 %v746_v7, %v170_v47  ;;  %493 = vst.msk [vmem:[%s1219_s3 + $0x80] sm:$0xff] %vm476_vm0, %v428_v54  ;;  %v430_v59 = vsel %vm302_vm4, %v238_v44, %v366_v52  ;;  %v171_v61 = vmul.f32 %v593_v48, %v732_v1 }
  0x22   :  { %494 = vst.msk [vmem:[%s1219_s3 + $0x88] sm:$0xff] %vm476_vm0, %v429_v55  ;;  %v431_v60 = vsel %vm303_vm5, %v239_v45, %v367_v53  ;;  %v172_v62 = vmul.f32 %v594_v49, %v732_v1  ;;  %495 = vst.msk [vmem:[%s1219_s3 + $0x90] sm:$0xff] %vm476_vm0, %v430_v59  ;;  %vm304_vm6 = vcmp.ge.f32.partialorder %v240_v56, 0.0  ;;  %v368_v0 = vmul.f32 0.01, %v240_v56  ;;  %v691_v45 = vld [vmem:[%s1216_s0 + $0x88] sm:$0xff]  }
  0x23   :  { %496 = vst.msk [vmem:[%s1219_s3 + $0x98] sm:$0xff] %vm476_vm0, %v431_v60  ;;  %vm305_vm7 = vcmp.ge.f32.partialorder %v241_v57, 0.0  ;;  %v369_v2 = vmul.f32 0.01, %v241_v57  ;;  %v242_v3 = vadd.f32 %v746_v7, %v171_v61  ;;  %v597_v5 = vunpack.c.l.bf16 %v686_v58 }
  0x24   :  { %v243_v4 = vadd.f32 %v746_v7, %v172_v62  ;;  %v598_v6 = vunpack.c.h.bf16 %v686_v58  ;;  %v432_v8 = vsel %vm304_vm6, %v240_v56, %v368_v0  ;;  %v601_v10 = vunpack.c.l.bf16 %v687_v63  ;;  %v692_v56 = vld [vmem:[%s1216_s0 + $0x90] sm:$0xff]  }
  0x25   :  { %v433_v9 = vsel %vm305_vm7, %v241_v57, %v369_v2  ;;  %v602_v11 = vunpack.c.h.bf16 %v687_v63  ;;  %497 = vst.msk [vmem:[%s1219_s3 + $0xa0] sm:$0xff] %vm476_vm0, %v432_v8  ;;  %vm306_vm8 = vcmp.ge.f32.partialorder %v242_v3, 0.0  ;;  %v370_v13 = vmul.f32 0.01, %v242_v3  ;;  %v693_v63 = vld [vmem:[%s1216_s0 + $0x98] sm:$0xff]  }
  0x26   :  { %498 = vst.msk [vmem:[%s1219_s3 + $0xa8] sm:$0xff] %vm476_vm0, %v433_v9  ;;  %vm307_vm9 = vcmp.ge.f32.partialorder %v243_v4, 0.0  ;;  %v371_v14 = vmul.f32 0.01, %v243_v4  ;;  %v173_v15 = vmul.f32 %v597_v5, %v732_v1  ;;  %v174_v16 = vmul.f32 %v598_v6, %v732_v1 }
  0x27   :  { %v175_v17 = vmul.f32 %v601_v10, %v732_v1  ;;  %v176_v18 = vmul.f32 %v602_v11, %v732_v1  ;;  %v434_v20 = vsel %vm306_vm8, %v242_v3, %v370_v13  ;;  %v605_v22 = vunpack.c.l.bf16 %v688_v12 }
  0x28   :  { %v435_v21 = vsel %vm307_vm9, %v243_v4, %v371_v14  ;;  %v606_v23 = vunpack.c.h.bf16 %v688_v12  ;;  %499 = vst.msk [vmem:[%s1219_s3 + $0xb0] sm:$0xff] %vm476_vm0, %v434_v20  ;;  %v244_v24 = vadd.f32 %v746_v7, %v173_v15  ;;  %v245_v25 = vadd.f32 %v746_v7, %v174_v16 }
  0x29   :  { %500 = vst.msk [vmem:[%s1219_s3 + $0xb8] sm:$0xff] %vm476_vm0, %v435_v21  ;;  %v246_v26 = vadd.f32 %v746_v7, %v175_v17  ;;  %v247_v27 = vadd.f32 %v746_v7, %v176_v18  ;;  %v177_v28 = vmul.f32 %v605_v22, %v732_v1  ;;  %v609_v30 = vunpack.c.l.bf16 %v689_v19  ;;  %v694_v22 = vld [vmem:[%s1216_s0 + $0xa0] sm:$0xff]  }
  0x2a   :  { %v178_v29 = vmul.f32 %v606_v23, %v732_v1  ;;  %v610_v31 = vunpack.c.h.bf16 %v689_v19  ;;  %vm308_vm10 = vcmp.ge.f32.partialorder %v244_v24, 0.0  ;;  %v372_v32 = vmul.f32 0.01, %v244_v24 }
  0x2b   :  { %vm309_vm11 = vcmp.ge.f32.partialorder %v245_v25, 0.0  ;;  %v373_v33 = vmul.f32 0.01, %v245_v25  ;;  %vm310_vm12 = vcmp.ge.f32.partialorder %v246_v26, 0.0  ;;  %v374_v34 = vmul.f32 0.01, %v246_v26 }
  0x2c   :  { %vm311_vm13 = vcmp.ge.f32.partialorder %v247_v27, 0.0  ;;  %v375_v35 = vmul.f32 0.01, %v247_v27  ;;  %v436_v36 = vsel %vm308_vm10, %v244_v24, %v372_v32  ;;  %v248_v38 = vadd.f32 %v746_v7, %v177_v28 }
  0x2d   :  { %v437_v37 = vsel %vm309_vm11, %v245_v25, %v373_v33  ;;  %v249_v39 = vadd.f32 %v746_v7, %v178_v29  ;;  %501 = vst.msk [vmem:[%s1219_s3 + $0xc0] sm:$0xff] %vm476_vm0, %v436_v36  ;;  %v438_v41 = vsel %vm310_vm12, %v246_v26, %v374_v34  ;;  %v179_v43 = vmul.f32 %v609_v30, %v732_v1 }
  0x2e   :  { %502 = vst.msk [vmem:[%s1219_s3 + $0xc8] sm:$0xff] %vm476_vm0, %v437_v37  ;;  %v439_v42 = vsel %vm311_vm13, %v247_v27, %v375_v35  ;;  %v180_v44 = vmul.f32 %v610_v31, %v732_v1  ;;  %503 = vst.msk [vmem:[%s1219_s3 + $0xd0] sm:$0xff] %vm476_vm0, %v438_v41  ;;  %vm312_vm14 = vcmp.ge.f32.partialorder %v248_v38, 0.0  ;;  %v376_v46 = vmul.f32 0.01, %v248_v38  ;;  %v695_v27 = vld [vmem:[%s1216_s0 + $0xa8] sm:$0xff]  }
  0x2f   :  { %504 = vst.msk [vmem:[%s1219_s3 + $0xd8] sm:$0xff] %vm476_vm0, %v439_v42  ;;  %vm313_vm15 = vcmp.ge.f32.partialorder %v249_v39, 0.0  ;;  %v377_v47 = vmul.f32 0.01, %v249_v39  ;;  %v250_v48 = vadd.f32 %v746_v7, %v179_v43  ;;  %v613_v50 = vunpack.c.l.bf16 %v690_v40 }
  0x30   :  { %v251_v49 = vadd.f32 %v746_v7, %v180_v44  ;;  %v614_v51 = vunpack.c.h.bf16 %v690_v40  ;;  %v440_v52 = vsel %vm312_vm14, %v248_v38, %v376_v46  ;;  %v617_v54 = vunpack.c.l.bf16 %v691_v45  ;;  %v696_v38 = vld [vmem:[%s1216_s0 + $0xb0] sm:$0xff]  }
  0x31   :  { %v441_v53 = vsel %vm313_vm15, %v249_v39, %v377_v47  ;;  %v618_v55 = vunpack.c.h.bf16 %v691_v45  ;;  %505 = vst.msk [vmem:[%s1219_s3 + $0xe0] sm:$0xff] %vm476_vm0, %v440_v52  ;;  %vm314_vm1 = vcmp.ge.f32.partialorder %v250_v48, 0.0  ;;  %v378_v57 = vmul.f32 0.01, %v250_v48  ;;  %v697_v45 = vld [vmem:[%s1216_s0 + $0xb8] sm:$0xff]  }
  0x32   :  { %506 = vst.msk [vmem:[%s1219_s3 + $0xe8] sm:$0xff] %vm476_vm0, %v441_v53  ;;  %vm315_vm2 = vcmp.ge.f32.partialorder %v251_v49, 0.0  ;;  %v379_v58 = vmul.f32 0.01, %v251_v49  ;;  %v181_v59 = vmul.f32 %v613_v50, %v732_v1  ;;  %v182_v60 = vmul.f32 %v614_v51, %v732_v1 }
  0x33   :  { %v183_v61 = vmul.f32 %v617_v54, %v732_v1  ;;  %v184_v62 = vmul.f32 %v618_v55, %v732_v1  ;;  %v442_v0 = vsel %vm314_vm1, %v250_v48, %v378_v57  ;;  %v621_v3 = vunpack.c.l.bf16 %v692_v56 }
  0x34   :  { %v443_v2 = vsel %vm315_vm2, %v251_v49, %v379_v58  ;;  %v622_v4 = vunpack.c.h.bf16 %v692_v56  ;;  %507 = vst.msk [vmem:[%s1219_s3 + $0xf0] sm:$0xff] %vm476_vm0, %v442_v0  ;;  %v252_v5 = vadd.f32 %v746_v7, %v181_v59  ;;  %v253_v6 = vadd.f32 %v746_v7, %v182_v60 }
  0x35   :  { %508 = vst.msk [vmem:[%s1219_s3 + $0xf8] sm:$0xff] %vm476_vm0, %v443_v2  ;;  %v254_v8 = vadd.f32 %v746_v7, %v183_v61  ;;  %v255_v9 = vadd.f32 %v746_v7, %v184_v62  ;;  %v185_v10 = vmul.f32 %v621_v3, %v732_v1  ;;  %v625_v12 = vunpack.c.l.bf16 %v693_v63  ;;  %v698_v3 = vld [vmem:[%s1216_s0 + $0xc0] sm:$0xff]  }
  0x36   :  { %v186_v11 = vmul.f32 %v622_v4, %v732_v1  ;;  %v626_v13 = vunpack.c.h.bf16 %v693_v63  ;;  %vm316_vm3 = vcmp.ge.f32.partialorder %v252_v5, 0.0  ;;  %v380_v14 = vmul.f32 0.01, %v252_v5 }
  0x37   :  { %vm317_vm4 = vcmp.ge.f32.partialorder %v253_v6, 0.0  ;;  %v381_v15 = vmul.f32 0.01, %v253_v6  ;;  %vm318_vm5 = vcmp.ge.f32.partialorder %v254_v8, 0.0  ;;  %v382_v16 = vmul.f32 0.01, %v254_v8 }
  0x38   :  { %vm319_vm6 = vcmp.ge.f32.partialorder %v255_v9, 0.0  ;;  %v383_v17 = vmul.f32 0.01, %v255_v9  ;;  %v444_v18 = vsel %vm316_vm3, %v252_v5, %v380_v14  ;;  %v256_v20 = vadd.f32 %v746_v7, %v185_v10 }
  0x39   :  { %v445_v19 = vsel %vm317_vm4, %v253_v6, %v381_v15  ;;  %v257_v21 = vadd.f32 %v746_v7, %v186_v11  ;;  %509 = vst.msk [vmem:[%s1219_s3 + $0x100] sm:$0xff] %vm476_vm0, %v444_v18  ;;  %v446_v23 = vsel %vm318_vm5, %v254_v8, %v382_v16  ;;  %v187_v25 = vmul.f32 %v625_v12, %v732_v1 }
  0x3a   :  { %510 = vst.msk [vmem:[%s1219_s3 + $0x108] sm:$0xff] %vm476_vm0, %v445_v19  ;;  %v447_v24 = vsel %vm319_vm6, %v255_v9, %v383_v17  ;;  %v188_v26 = vmul.f32 %v626_v13, %v732_v1  ;;  %511 = vst.msk [vmem:[%s1219_s3 + $0x110] sm:$0xff] %vm476_vm0, %v446_v23  ;;  %vm320_vm7 = vcmp.ge.f32.partialorder %v256_v20, 0.0  ;;  %v384_v28 = vmul.f32 0.01, %v256_v20  ;;  %v699_v9 = vld [vmem:[%s1216_s0 + $0xc8] sm:$0xff]  }
  0x3b   :  { %512 = vst.msk [vmem:[%s1219_s3 + $0x118] sm:$0xff] %vm476_vm0, %v447_v24  ;;  %vm321_vm8 = vcmp.ge.f32.partialorder %v257_v21, 0.0  ;;  %v385_v29 = vmul.f32 0.01, %v257_v21  ;;  %v258_v30 = vadd.f32 %v746_v7, %v187_v25  ;;  %v629_v32 = vunpack.c.l.bf16 %v694_v22 }
  0x3c   :  { %v259_v31 = vadd.f32 %v746_v7, %v188_v26  ;;  %v630_v33 = vunpack.c.h.bf16 %v694_v22  ;;  %v448_v34 = vsel %vm320_vm7, %v256_v20, %v384_v28  ;;  %v633_v36 = vunpack.c.l.bf16 %v695_v27  ;;  %v700_v20 = vld [vmem:[%s1216_s0 + $0xd0] sm:$0xff]  }
  0x3d   :  { %v449_v35 = vsel %vm321_vm8, %v257_v21, %v385_v29  ;;  %v634_v37 = vunpack.c.h.bf16 %v695_v27  ;;  %513 = vst.msk [vmem:[%s1219_s3 + $0x120] sm:$0xff] %vm476_vm0, %v448_v34  ;;  %vm322_vm9 = vcmp.ge.f32.partialorder %v258_v30, 0.0  ;;  %v386_v39 = vmul.f32 0.01, %v258_v30  ;;  %v701_v27 = vld [vmem:[%s1216_s0 + $0xd8] sm:$0xff]  }
  0x3e   :  { %514 = vst.msk [vmem:[%s1219_s3 + $0x128] sm:$0xff] %vm476_vm0, %v449_v35  ;;  %vm323_vm10 = vcmp.ge.f32.partialorder %v259_v31, 0.0  ;;  %v387_v40 = vmul.f32 0.01, %v259_v31  ;;  %v189_v41 = vmul.f32 %v629_v32, %v732_v1  ;;  %v190_v42 = vmul.f32 %v630_v33, %v732_v1 }
  0x3f   :  { %v191_v43 = vmul.f32 %v633_v36, %v732_v1  ;;  %v192_v44 = vmul.f32 %v634_v37, %v732_v1  ;;  %v450_v46 = vsel %vm322_vm9, %v258_v30, %v386_v39  ;;  %v637_v48 = vunpack.c.l.bf16 %v696_v38 }
  0x40   :  { %v451_v47 = vsel %vm323_vm10, %v259_v31, %v387_v40  ;;  %v638_v49 = vunpack.c.h.bf16 %v696_v38  ;;  %515 = vst.msk [vmem:[%s1219_s3 + $0x130] sm:$0xff] %vm476_vm0, %v450_v46  ;;  %v260_v50 = vadd.f32 %v746_v7, %v189_v41  ;;  %v261_v51 = vadd.f32 %v746_v7, %v190_v42 }
  0x41   :  { %516 = vst.msk [vmem:[%s1219_s3 + $0x138] sm:$0xff] %vm476_vm0, %v451_v47  ;;  %v262_v52 = vadd.f32 %v746_v7, %v191_v43  ;;  %v263_v53 = vadd.f32 %v746_v7, %v192_v44  ;;  %v193_v54 = vmul.f32 %v637_v48, %v732_v1  ;;  %v641_v56 = vunpack.c.l.bf16 %v697_v45  ;;  %v702_v48 = vld [vmem:[%s1216_s0 + $0xe0] sm:$0xff]  }
  0x42   :  { %v194_v55 = vmul.f32 %v638_v49, %v732_v1  ;;  %v642_v57 = vunpack.c.h.bf16 %v697_v45  ;;  %vm324_vm11 = vcmp.ge.f32.partialorder %v260_v50, 0.0  ;;  %v388_v58 = vmul.f32 0.01, %v260_v50 }
  0x43   :  { %vm325_vm12 = vcmp.ge.f32.partialorder %v261_v51, 0.0  ;;  %v389_v59 = vmul.f32 0.01, %v261_v51  ;;  %vm326_vm13 = vcmp.ge.f32.partialorder %v262_v52, 0.0  ;;  %v390_v60 = vmul.f32 0.01, %v262_v52 }
  0x44   :  { %vm327_vm14 = vcmp.ge.f32.partialorder %v263_v53, 0.0  ;;  %v391_v61 = vmul.f32 0.01, %v263_v53  ;;  %v452_v62 = vsel %vm324_vm11, %v260_v50, %v388_v58  ;;  %v264_v0 = vadd.f32 %v746_v7, %v193_v54 }
  0x45   :  { %v453_v63 = vsel %vm325_vm12, %v261_v51, %v389_v59  ;;  %v265_v2 = vadd.f32 %v746_v7, %v194_v55  ;;  %517 = vst.msk [vmem:[%s1219_s3 + $0x140] sm:$0xff] %vm476_vm0, %v452_v62  ;;  %v454_v4 = vsel %vm326_vm13, %v262_v52, %v390_v60  ;;  %v195_v6 = vmul.f32 %v641_v56, %v732_v1 }
  0x46   :  { %518 = vst.msk [vmem:[%s1219_s3 + $0x148] sm:$0xff] %vm476_vm0, %v453_v63  ;;  %v455_v5 = vsel %vm327_vm14, %v263_v53, %v391_v61  ;;  %v196_v8 = vmul.f32 %v642_v57, %v732_v1  ;;  %519 = vst.msk [vmem:[%s1219_s3 + $0x150] sm:$0xff] %vm476_vm0, %v454_v4  ;;  %vm328_vm15 = vcmp.ge.f32.partialorder %v264_v0, 0.0  ;;  %v392_v10 = vmul.f32 0.01, %v264_v0  ;;  %v703_v53 = vld [vmem:[%s1216_s0 + $0xe8] sm:$0xff]  }
  0x47   :  { %520 = vst.msk [vmem:[%s1219_s3 + $0x158] sm:$0xff] %vm476_vm0, %v455_v5  ;;  %vm329_vm1 = vcmp.ge.f32.partialorder %v265_v2, 0.0  ;;  %v393_v11 = vmul.f32 0.01, %v265_v2  ;;  %v266_v12 = vadd.f32 %v746_v7, %v195_v6  ;;  %v645_v14 = vunpack.c.l.bf16 %v698_v3 }
  0x48   :  { %v267_v13 = vadd.f32 %v746_v7, %v196_v8  ;;  %v646_v15 = vunpack.c.h.bf16 %v698_v3  ;;  %v456_v16 = vsel %vm328_vm15, %v264_v0, %v392_v10  ;;  %v649_v18 = vunpack.c.l.bf16 %v699_v9  ;;  %v704_v0 = vld [vmem:[%s1216_s0 + $0xf0] sm:$0xff]  }
  0x49   :  { %v457_v17 = vsel %vm329_vm1, %v265_v2, %v393_v11  ;;  %v650_v19 = vunpack.c.h.bf16 %v699_v9  ;;  %521 = vst.msk [vmem:[%s1219_s3 + $0x160] sm:$0xff] %vm476_vm0, %v456_v16  ;;  %vm330_vm2 = vcmp.ge.f32.partialorder %v266_v12, 0.0  ;;  %v394_v21 = vmul.f32 0.01, %v266_v12  ;;  %v705_v9 = vld [vmem:[%s1216_s0 + $0xf8] sm:$0xff]  }
  0x4a   :  { %522 = vst.msk [vmem:[%s1219_s3 + $0x168] sm:$0xff] %vm476_vm0, %v457_v17  ;;  %vm331_vm3 = vcmp.ge.f32.partialorder %v267_v13, 0.0  ;;  %v395_v22 = vmul.f32 0.01, %v267_v13  ;;  %v197_v23 = vmul.f32 %v645_v14, %v732_v1  ;;  %v198_v24 = vmul.f32 %v646_v15, %v732_v1 }
  0x4b   :  { %v199_v25 = vmul.f32 %v649_v18, %v732_v1  ;;  %v200_v26 = vmul.f32 %v650_v19, %v732_v1  ;;  %v458_v28 = vsel %vm330_vm2, %v266_v12, %v394_v21  ;;  %v653_v30 = vunpack.c.l.bf16 %v700_v20 }
  0x4c   :  { %v459_v29 = vsel %vm331_vm3, %v267_v13, %v395_v22  ;;  %v654_v31 = vunpack.c.h.bf16 %v700_v20  ;;  %523 = vst.msk [vmem:[%s1219_s3 + $0x170] sm:$0xff] %vm476_vm0, %v458_v28  ;;  %v268_v32 = vadd.f32 %v746_v7, %v197_v23  ;;  %v269_v33 = vadd.f32 %v746_v7, %v198_v24 }
  0x4d   :  { %524 = vst.msk [vmem:[%s1219_s3 + $0x178] sm:$0xff] %vm476_vm0, %v459_v29  ;;  %v270_v34 = vadd.f32 %v746_v7, %v199_v25  ;;  %v271_v35 = vadd.f32 %v746_v7, %v200_v26  ;;  %v201_v36 = vmul.f32 %v653_v30, %v732_v1  ;;  %v657_v38 = vunpack.c.l.bf16 %v701_v27 }
  0x4e   :  { %v202_v37 = vmul.f32 %v654_v31, %v732_v1  ;;  %v658_v39 = vunpack.c.h.bf16 %v701_v27  ;;  %vm332_vm4 = vcmp.ge.f32.partialorder %v268_v32, 0.0  ;;  %v396_v40 = vmul.f32 0.01, %v268_v32 }
  0x4f   :  { %vm333_vm5 = vcmp.ge.f32.partialorder %v269_v33, 0.0  ;;  %v397_v41 = vmul.f32 0.01, %v269_v33  ;;  %vm334_vm6 = vcmp.ge.f32.partialorder %v270_v34, 0.0  ;;  %v398_v42 = vmul.f32 0.01, %v270_v34 }
  0x50   :  { %vm335_vm7 = vcmp.ge.f32.partialorder %v271_v35, 0.0  ;;  %v399_v43 = vmul.f32 0.01, %v271_v35  ;;  %v460_v44 = vsel %vm332_vm4, %v268_v32, %v396_v40  ;;  %v272_v46 = vadd.f32 %v746_v7, %v201_v36 }
  0x51   :  { %v461_v45 = vsel %vm333_vm5, %v269_v33, %v397_v41  ;;  %v273_v47 = vadd.f32 %v746_v7, %v202_v37  ;;  %525 = vst.msk [vmem:[%s1219_s3 + $0x180] sm:$0xff] %vm476_vm0, %v460_v44  ;;  %v462_v49 = vsel %vm334_vm6, %v270_v34, %v398_v42  ;;  %v203_v51 = vmul.f32 %v657_v38, %v732_v1 }
  0x52   :  { %526 = vst.msk [vmem:[%s1219_s3 + $0x188] sm:$0xff] %vm476_vm0, %v461_v45  ;;  %v463_v50 = vsel %vm335_vm7, %v271_v35, %v399_v43  ;;  %v204_v52 = vmul.f32 %v658_v39, %v732_v1  ;;  %527 = vst.msk [vmem:[%s1219_s3 + $0x190] sm:$0xff] %vm476_vm0, %v462_v49  ;;  %vm336_vm8 = vcmp.ge.f32.partialorder %v272_v46, 0.0  ;;  %v400_v54 = vmul.f32 0.01, %v272_v46 }
  0x53   :  { %528 = vst.msk [vmem:[%s1219_s3 + $0x198] sm:$0xff] %vm476_vm0, %v463_v50  ;;  %vm337_vm9 = vcmp.ge.f32.partialorder %v273_v47, 0.0  ;;  %v401_v55 = vmul.f32 0.01, %v273_v47  ;;  %v274_v56 = vadd.f32 %v746_v7, %v203_v51  ;;  %v661_v58 = vunpack.c.l.bf16 %v702_v48 }
  0x54   :  { %v275_v57 = vadd.f32 %v746_v7, %v204_v52  ;;  %v662_v59 = vunpack.c.h.bf16 %v702_v48  ;;  %v464_v60 = vsel %vm336_vm8, %v272_v46, %v400_v54  ;;  %v665_v62 = vunpack.c.l.bf16 %v703_v53 }
  0x55   :  { %v465_v61 = vsel %vm337_vm9, %v273_v47, %v401_v55  ;;  %v666_v63 = vunpack.c.h.bf16 %v703_v53  ;;  %529 = vst.msk [vmem:[%s1219_s3 + $0x1a0] sm:$0xff] %vm476_vm0, %v464_v60  ;;  %vm338_vm10 = vcmp.ge.f32.partialorder %v274_v56, 0.0  ;;  %v402_v2 = vmul.f32 0.01, %v274_v56 }
  0x56   :  { %530 = vst.msk [vmem:[%s1219_s3 + $0x1a8] sm:$0xff] %vm476_vm0, %v465_v61  ;;  %vm339_vm11 = vcmp.ge.f32.partialorder %v275_v57, 0.0  ;;  %v403_v3 = vmul.f32 0.01, %v275_v57  ;;  %v205_v4 = vmul.f32 %v661_v58, %v732_v1  ;;  %v206_v5 = vmul.f32 %v662_v59, %v732_v1 }
  0x57   :  { %v207_v6 = vmul.f32 %v665_v62, %v732_v1  ;;  %v208_v8 = vmul.f32 %v666_v63, %v732_v1  ;;  %v466_v10 = vsel %vm338_vm10, %v274_v56, %v402_v2  ;;  %v669_v12 = vunpack.c.l.bf16 %v704_v0 }
  0x58   :  { %v467_v11 = vsel %vm339_vm11, %v275_v57, %v403_v3  ;;  %v670_v13 = vunpack.c.h.bf16 %v704_v0  ;;  %531 = vst.msk [vmem:[%s1219_s3 + $0x1b0] sm:$0xff] %vm476_vm0, %v466_v10  ;;  %v276_v14 = vadd.f32 %v746_v7, %v205_v4  ;;  %v277_v15 = vadd.f32 %v746_v7, %v206_v5 }
  0x59   :  { %532 = vst.msk [vmem:[%s1219_s3 + $0x1b8] sm:$0xff] %vm476_vm0, %v467_v11  ;;  %v278_v16 = vadd.f32 %v746_v7, %v207_v6  ;;  %v279_v17 = vadd.f32 %v746_v7, %v208_v8  ;;  %v209_v18 = vmul.f32 %v669_v12, %v732_v1  ;;  %v673_v20 = vunpack.c.l.bf16 %v705_v9 }
  0x5a   :  { %v210_v19 = vmul.f32 %v670_v13, %v732_v1  ;;  %v674_v21 = vunpack.c.h.bf16 %v705_v9  ;;  %vm340_vm12 = vcmp.ge.f32.partialorder %v276_v14, 0.0  ;;  %v404_v22 = vmul.f32 0.01, %v276_v14 }
  0x5b   :  { %vm341_vm13 = vcmp.ge.f32.partialorder %v277_v15, 0.0  ;;  %v405_v23 = vmul.f32 0.01, %v277_v15  ;;  %vm342_vm14 = vcmp.ge.f32.partialorder %v278_v16, 0.0  ;;  %v406_v24 = vmul.f32 0.01, %v278_v16 }
  0x5c   :  { %vm343_vm15 = vcmp.ge.f32.partialorder %v279_v17, 0.0  ;;  %v407_v25 = vmul.f32 0.01, %v279_v17  ;;  %v468_v26 = vsel %vm340_vm12, %v276_v14, %v404_v22  ;;  %v280_v28 = vadd.f32 %v746_v7, %v209_v18 }
  0x5d   :  { %v469_v27 = vsel %vm341_vm13, %v277_v15, %v405_v23  ;;  %v281_v29 = vadd.f32 %v746_v7, %v210_v19  ;;  %533 = vst.msk [vmem:[%s1219_s3 + $0x1c0] sm:$0xff] %vm476_vm0, %v468_v26  ;;  %v470_v30 = vsel %vm342_vm14, %v278_v16, %v406_v24  ;;  %v211_v32 = vmul.f32 %v673_v20, %v732_v1 }
  0x5e   :  { %534 = vst.msk [vmem:[%s1219_s3 + $0x1c8] sm:$0xff] %vm476_vm0, %v469_v27  ;;  %v471_v31 = vsel %vm343_vm15, %v279_v17, %v407_v25  ;;  %v212_v33 = vmul.f32 %v674_v21, %v732_v1  ;;  %535 = vst.msk [vmem:[%s1219_s3 + $0x1d0] sm:$0xff] %vm476_vm0, %v470_v30  ;;  %vm344_vm1 = vcmp.ge.f32.partialorder %v280_v28, 0.0  ;;  %v408_v34 = vmul.f32 0.01, %v280_v28 }
  0x5f   :  { %536 = vst.msk [vmem:[%s1219_s3 + $0x1d8] sm:$0xff] %vm476_vm0, %v471_v31  ;;  %vm345_vm2 = vcmp.ge.f32.partialorder %v281_v29, 0.0  ;;  %v409_v35 = vmul.f32 0.01, %v281_v29  ;;  %v282_v36 = vadd.f32 %v746_v7, %v211_v32 }
  0x60   :  { %v283_v37 = vadd.f32 %v746_v7, %v212_v33  ;;  %v472_v38 = vsel %vm344_vm1, %v280_v28, %v408_v34 }
  0x61   :  { %v473_v1 = vsel %vm345_vm2, %v281_v29, %v409_v35  ;;  %537 = vst.msk [vmem:[%s1219_s3 + $0x1e0] sm:$0xff] %vm476_vm0, %v472_v38  ;;  %vm346_vm3 = vcmp.ge.f32.partialorder %v282_v36, 0.0  ;;  %v410_v39 = vmul.f32 0.01, %v282_v36 }
  0x62   :  { %538 = vst.msk [vmem:[%s1219_s3 + $0x1e8] sm:$0xff] %vm476_vm0, %v473_v1  ;;  %vm347_vm4 = vcmp.ge.f32.partialorder %v283_v37, 0.0  ;;  %v411_v40 = vmul.f32 0.01, %v283_v37 }
  0x63   :  { %v474_v41 = vsel %vm346_vm3, %v282_v36, %v410_v39 }
  0x64   :  { %v475_v42 = vsel %vm347_vm4, %v283_v37, %v411_v40  ;;  %539 = vst.msk [vmem:[%s1219_s3 + $0x1f0] sm:$0xff] %vm476_vm0, %v474_v41 }
  0x65   :  { %540 = vst.msk [vmem:[%s1219_s3 + $0x1f8] sm:$0xff] %vm476_vm0, %v475_v42 }

// kernel: basic_convT_forward.2
= control target key start
LH: loop header
LB: loop body
LE: loop exit
PB: predicated region body
PF: predicated region fallthrough
CT: control target
= control target key end

     0   :  { %s2996_s12 = smov 0   ;;  %s2998_s13 = smov 0   ;;  %s3485_s0 = inlined_call_operand.vmem [shape: f32[2,10,10,4], index: 0, kind: input, shape index: {}]   ;;  %s3486_s1 = inlined_call_operand.vmem [shape: bf16[4,4,4,8], index: 1, kind: input, shape index: {}]   ;;  %s3487_s2 = inlined_call_operand.vmem [shape: bf16[2,4,64,8], index: 2, kind: output, shape index: {0}]   ;;  %s3488_s3 = inlined_call_operand.vmem [shape: f32[2,1,2,8], index: 3, kind: output, shape index: {1}]  }
   0x1   :  { %s3000_s14 = smov 0  }
   0x2 LB: > { %s26_s15 = sadd.s32 1, %s2970_s13  ;;  %p2304_p0 = scmp.ge.s32.totalorder %s2974_s14, 1  ;;  %s2974_s14 = sphi %s3000_s14, %s14_s14   ;;  %s2970_s13 = sphi %s2998_s13, %s3490_s13   ;;  %s2966_s12 = sphi %s2996_s12, %s3489_s12  }
   0x3   : > { %p28_p1 = scmp.ge.s32.totalorder %s26_s15, 2  ;;  %p156_p2 = scmp.lt.s32.totalorder %s2974_s14, 3 }
   0x5   : > { %s3492_s15 = smov (%p28_p1, %s26_s15), 0  ;;  %p157_p3 = pnand %p2304_p0, %p156_p2 }
   0x6   : > { %v2325_v0 = vld [vmem:[%s3486_s1 + $0x2] sm:$0x3] (!%p157_p3)  ;;  %vm258_vm0 = vcmask (!%p157_p3), 1041408   ;;  %v2369_v1 = vld [vmem:[%s3486_s1 + $0xa] sm:$0x3] (!%p157_p3)  ;;  %p191_p4 = scmp.lt.s32.totalorder (!%p157_p3), %s2966_s12, 1 }
   0x7   : > { %160 = sbr.rel (%p157_p3) target bundleno = 389 (0x185), region = 28  ;;  %2911 = vmatprep.subr.msk.bf16.mxu0 (!%p157_p3), %vm258_vm0, %v2325_v0  ;;  %v260_v2 = vsel (!%p157_p3), %vm258_vm0, %v2325_v0, 0  ;;  %2915 = vmatprep.subr.msk.bf16.mxu1 (!%p157_p3), %vm258_vm0, %v2369_v1  ;;  %v748_v3 = vsel (!%p157_p3), %vm258_vm0, %v2369_v1, 0  ;;  %v230_v4 = vld [vmem:[%s3486_s1] sm:$0x3] (!%p157_p3)  ;;  %vm245_vm1 = vcmask (!%p157_p3), 31744  }
   0x8   : > { %2656 = vmatpush3.bf16.msra.mxu0 (!%p157_p3), %v260_v2  ;;  %2696 = vmatpush3.bf16.msra.mxu1 (!%p157_p3), %v748_v3  ;;  %v2360_v5 = vld [vmem:[%s3486_s1 + $0x8] sm:$0x3] (!%p157_p3)  ;;  %v340_v15 = vsel (!%p157_p3), %vm258_vm0, %v230_v4, 0  ;;  %v2334_v26 = vld [vmem:[%s3486_s1 + $0x4] sm:$0x3] (!%p157_p3)  ;;  %vm645_vm2 = vcmask (!%p157_p3), 60416  }
   0x9   : > { %2912 = vmatprep.subr.msk.bf16.mxu0 (!%p157_p3), %vm258_vm0, %v230_v4  ;;  %2916 = vmatprep.subr.msk.bf16.mxu1 (!%p157_p3), %vm258_vm0, %v2360_v5  ;;  %v828_v20 = vsel (!%p157_p3), %vm258_vm0, %v2360_v5, 0  ;;  %v2378_v29 = vld [vmem:[%s3486_s1 + $0xc] sm:$0x3] (!%p157_p3)  ;;  %v436_v49 = vsel (!%p157_p3), %vm258_vm0, %v2334_v26, 0  ;;  %v2339_v52 = vld [vmem:[%s3486_s1 + $0x6] sm:$0x3] (!%p157_p3) }
   0xa   : > { %v922_v50 = vsel (!%p157_p3), %vm258_vm0, %v2378_v29, 0  ;;  %v2383_v53 = vld [vmem:[%s3486_s1 + $0xe] sm:$0x3] (!%p157_p3)  ;;  %v538_v62 = vsel (!%p157_p3), %vm258_vm0, %v2339_v52, 0  ;;  %v2421_v2 = vld [vmem:[%s3486_s1 + $0x12] sm:$0x3] (!%p157_p3) }
   0xb   : > { %v1024_v0 = vsel (!%p157_p3), %vm258_vm0, %v2383_v53, 0  ;;  %v2489_v3 = vld [vmem:[%s3486_s1 + $0x1a] sm:$0x3] (!%p157_p3)  ;;  %vm654_vm3 = vcmask (!%p157_p3), 64512   ;;  %vm2165_vm4 = vcmask (!%p157_p3), 57344  }
   0xe   : > { %s3494_s12 = smov (!%p191_p4, %s2966_s12), 1 }
   0xf   : > { %s2927_s24 = smul.u32 160, %s3494_s12  ;;  %s2542_s29 = sshll.u32 %s3494_s12, 7 }
  0x10   : > { %s3336_s5 = scalar_lea.vmem %s3487_s2, %s2542_s29  ;;  %s2308_s6 = sshll.u32 %s3494_s12, 1 }
  0x11   : > { %s3038_s27 = scalar_lea.vmem %s3485_s0, %s2927_s24  ;;  %s212_s9 = scalar_lea.vmem %s3488_s3, %s2308_s6 }
  0x12   : > { %v3041_v6 = vld [vmem:[%s3038_s27 + $0x10] sm:$0xff]  ;;  %v3044_v7 = vld [vmem:[%s3038_s27 + $0x20] sm:$0xff] }
  0x13   : > { %v3047_v8 = vld [vmem:[%s3038_s27 + $0x11] sm:$0xff]  ;;  %v3051_v9 = vpack.c.bf16 %v3044_v7, %v3041_v6  ;;  %v3054_v10 = vld [vmem:[%s3038_s27 + $0x21] sm:$0xff] }
  0x14   : > { %v3057_v11 = vld [vmem:[%s3038_s27 + $0x30] sm:$0xff]  ;;  %v3060_v12 = vld [vmem:[%s3038_s27 + $0x40] sm:$0xff]  ;;  %v3064_v13 = vpack.c.bf16 %v3054_v10, %v3047_v8 }
  0x15   : > { %v3068_v14 = vpack.c.bf16 %v3060_v12, %v3057_v11  ;;  %v3072_v16 = vld [vmem:[%s3038_s27 + $0x31] sm:$0xff]  ;;  %v3075_v17 = vld [vmem:[%s3038_s27 + $0x41] sm:$0xff]  ;;  %2657 = vmatprep.mubr.msk.bf16.mxu0 %vm245_vm1, %v3051_v9 }
  0x16   : > { %v3078_v18 = vld [vmem:[%s3038_s27 + $0x50] sm:$0xff]  ;;  %v3084_v19 = vpack.c.bf16 %v3075_v17, %v3072_v16  ;;  %v3088_v21 = vld [vmem:[%s3038_s27 + $0x60] sm:$0xff]  ;;  %2697 = vmatprep.mubr.msk.bf16.mxu1 %vm245_vm1, %v3064_v13  ;;  %v418_v60 = vpack.c.bf16 %v3072_v16, %v3054_v10  ;;  %v1236_v16 = vsel %vm258_vm0, %v2421_v2, 0 }
  0x17   : > { %v3091_v22 = vld [vmem:[%s3038_s27 + $0x51] sm:$0xff]  ;;  %v3094_v23 = vld [vmem:[%s3038_s27 + $0x61] sm:$0xff]  ;;  %2658 = vmatmul.mubr.msk.bf16.vlgmr.msra.gmra.mrb[0].mxu0 %vm245_vm1, %v3068_v14  ;;  %v3102_v24 = vpack.c.bf16 %v3088_v21, %v3078_v18 }
  0x18   : > { %v3106_v25 = vpack.c.bf16 %v3094_v23, %v3091_v22  ;;  %2666 = vmatpush3.bf16.msra.mxu0 %v340_v15  ;;  %2698 = vmatmul.mubr.msk.bf16.vlgmr.msra.gmra.mrb[0].mxu1 %vm245_vm1, %v3084_v19  ;;  %v3114_v27 = vld [vmem:[%s3038_s27 + $0x70] sm:$0xff]  ;;  %v3117_v28 = vld [vmem:[%s3038_s27 + $0x80] sm:$0xff]  ;;  %v419_v63 = vpack.c.bf16 %v3091_v22, %v3075_v17  ;;  %v520_v15 = vpack.c.bf16 %v3057_v11, %v3044_v7  ;;  %v2480_v7 = vld [vmem:[%s3486_s1 + $0x18] sm:$0x3] }
  0x19   : > { %2706 = vmatpush3.bf16.msra.mxu1 %v828_v20  ;;  %2661 = vmatprep.mubr.msk.bf16.mxu0 %vm245_vm1, %v3102_v24  ;;  %v3125_v30 = vld [vmem:[%s3038_s27 + $0x71] sm:$0xff]  ;;  %v2368_v31 = vld [vmem:[%s3038_s27 + $0x81] sm:$0xff]  ;;  %v3135_v34 = vpack.c.bf16 %v3117_v28, %v3114_v27  ;;  %v521_v17 = vpack.c.bf16 %v3078_v18, %v3060_v12  ;;  %v1721_v20 = vsel %vm258_vm0, %v2489_v3, 0  ;;  %v522_v11 = vpack.c.bf16 %v3114_v27, %v3088_v21  ;;  %v2506_v22 = vld [vmem:[%s3486_s1 + $0x1c] sm:$0x3] }
  0x1a   : > { %2701 = vmatprep.mubr.msk.bf16.mxu1 %vm245_vm1, %v3106_v25  ;;  %2913 = vmatprep.subr.msk.bf16.mxu0 %vm258_vm0, %v2334_v26  ;;  %v2352_v32 = vld [vmem:[%s3038_s27 + $0x12] sm:$0xff]  ;;  %v2353_v33 = vld [vmem:[%s3038_s27 + $0x22] sm:$0xff]  ;;  %v3139_v35 = vpack.c.bf16 %v2368_v31, %v3125_v30  ;;  %v420_v5 = vpack.c.bf16 %v3125_v30, %v3094_v23  ;;  %v1801_v18 = vsel %vm258_vm0, %v2480_v7, 0  ;;  %v1895_v26 = vsel %vm258_vm0, %v2506_v22, 0 }
  0x1b   : > { %2917 = vmatprep.subr.msk.bf16.mxu1 %vm258_vm0, %v2378_v29  ;;  %v3142_v36 = vld [vmem:[%s3038_s27 + $0x90] sm:$0xff]  ;;  %v3145_v38 = vpack.c.bf16 %v2353_v33, %v2352_v32  ;;  %v3148_v39 = vld [vmem:[%s3038_s27 + $0x82] sm:$0xff] }
  0x1c   : > { %v2488_v37 = vld [vmem:[%s3038_s27 + $0x91] sm:$0xff]  ;;  %v1220_v40 = vpack.c.bf16 %v3142_v36, %v3117_v28  ;;  %v2355_v45 = vld [vmem:[%s3038_s27 + $0x42] sm:$0xff]  ;;  %v2519_v28 = vld [vmem:[%s3486_s1 + $0x1e] sm:$0x3] }
  0x1d   : > { %v3152_v41 = vpack.c.bf16 %v2488_v37, %v2368_v31  ;;  %v3155_v42 = vld [vmem:[%s3038_s27 + $0x92] sm:$0xff]  ;;  %v2357_v47 = vld [vmem:[%s3038_s27 + $0x62] sm:$0xff]  ;;  %v1997_v30 = vsel %vm258_vm0, %v2519_v28, 0 }
  0x1e   : > { %v1691_v43 = vpack.c.bf16 %v3155_v42, %v3148_v39  ;;  %v2354_v44 = vld [vmem:[%s3038_s27 + $0x32] sm:$0xff]  ;;  %v409_v55 = vld [vmem:[%s3038_s27 + $0x1] sm:$0xff] }
  0x1f   : > { %2662 = vmatmul.mubr.msk.bf16.gmra.mrb[4].mxu0 %vm245_vm1, %v3135_v34  ;;  %v2356_v46 = vld [vmem:[%s3038_s27 + $0x52] sm:$0xff]  ;;  %v3171_v48 = vpack.c.bf16 %v2355_v45, %v2354_v44  ;;  %v895_v56 = vld [vmem:[%s3038_s27 + $0x2] sm:$0xff]  ;;  %v417_v58 = vpack.c.bf16 %v3047_v8, %v409_v55  ;;  %v904_v61 = vpack.c.bf16 %v2354_v44, %v2353_v33 }
  0x20   : > { %2702 = vmatmul.mubr.msk.bf16.gmra.mrb[4].mxu1 %vm245_vm1, %v3139_v35  ;;  %2667 = vmatprep.mubr.msk.bf16.mxu0 %vm245_vm1, %v3064_v13  ;;  %v3175_v51 = vpack.c.bf16 %v2357_v47, %v2356_v46  ;;  %v2358_v54 = vld [vmem:[%s3038_s27 + $0x72] sm:$0xff]  ;;  %v903_v59 = vpack.c.bf16 %v2352_v32, %v895_v56  ;;  %v905_v1 = vpack.c.bf16 %v2356_v46, %v2355_v45  ;;  %v511_v4 = vld [vmem:[%s3038_s27] sm:$0xff] }
  0x21   : > { %2707 = vmatprep.mubr.msk.bf16.mxu1 %vm245_vm1, %v3145_v38  ;;  %v3197_v57 = vpack.c.bf16 %v3148_v39, %v2358_v54  ;;  %v906_v8 = vpack.c.bf16 %v2358_v54, %v2357_v47  ;;  %v519_v10 = vpack.c.bf16 %v3041_v6, %v511_v4  ;;  %v2412_v6 = vld [vmem:[%s3486_s1 + $0x10] sm:$0x3]  ;;  %v2438_v21 = vld [vmem:[%s3486_s1 + $0x14] sm:$0x3]  ;;  %v2451_v27 = vld [vmem:[%s3486_s1 + $0x16] sm:$0x3] }
  0x22   : > { %v1316_v12 = vsel %vm258_vm0, %v2412_v6, 0  ;;  %v1410_v23 = vsel %vm258_vm0, %v2438_v21, 0  ;;  %v1512_v29 = vsel %vm258_vm0, %v2451_v27, 0 }
  0x27   : > { %2668 = vmatmul.mubr.msk.bf16.vlgmr.msra.gmra.mrb[0].mxu0 %vm245_vm1, %v3084_v19 }
  0x28   : > { %2676 = vmatpush3.bf16.msra.mxu0 %v436_v49  ;;  %2708 = vmatmul.mubr.msk.bf16.vlgmr.msra.gmra.mrb[0].mxu1 %vm245_vm1, %v3171_v48 }
  0x29   : > { %2716 = vmatpush3.bf16.msra.mxu1 %v922_v50  ;;  %2671 = vmatprep.mubr.msk.bf16.mxu0 %vm245_vm1, %v3106_v25 }
  0x2a   : > { %2711 = vmatprep.mubr.msk.bf16.mxu1 %vm245_vm1, %v3175_v51  ;;  %2914 = vmatprep.subr.msk.bf16.mxu0 %vm258_vm0, %v2339_v52 }
  0x2b   : > { %2918 = vmatprep.subr.msk.bf16.mxu1 %vm258_vm0, %v2383_v53 }
  0x2f   : > { %2672 = vmatmul.mubr.msk.bf16.gmra.mrb[4].mxu0 %vm245_vm1, %v3139_v35 }
  0x30   : > { %2712 = vmatmul.mubr.msk.bf16.gmra.mrb[4].mxu1 %vm245_vm1, %v3197_v57  ;;  %2677 = vmatprep.mubr.msk.bf16.mxu0 %vm245_vm1, %v417_v58 }
  0x31   : > { %2717 = vmatprep.mubr.msk.bf16.mxu1 %vm245_vm1, %v903_v59 }
  0x37   : > { %2678 = vmatmul.mubr.msk.bf16.vlgmr.msra.gmra.mrb[0].mxu0 %vm245_vm1, %v418_v60 }
  0x38   : > { %2686 = vmatpush3.bf16.msra.mxu0 %v538_v62  ;;  %2718 = vmatmul.mubr.msk.bf16.vlgmr.msra.gmra.mrb[0].mxu1 %vm245_vm1, %v904_v61 }
  0x39   : > { %2726 = vmatpush3.bf16.msra.mxu1 %v1024_v0  ;;  %2681 = vmatprep.mubr.msk.bf16.mxu0 %vm245_vm1, %v419_v63 }
  0x3a   : > { %2721 = vmatprep.mubr.msk.bf16.mxu1 %vm245_vm1, %v905_v1  ;;  %2919 = vmatprep.subr.msk.bf16.mxu0 %vm258_vm0, %v2421_v2 }
  0x3b   : > { %2923 = vmatprep.subr.msk.bf16.mxu1 %vm258_vm0, %v2489_v3 }
  0x3f   : > { %2682 = vmatmul.mubr.msk.bf16.gmra.mrb[4].mxu0 %vm245_vm1, %v420_v5 }
  0x40   : > { %2722 = vmatmul.mubr.msk.bf16.gmra.mrb[4].mxu1 %vm245_vm1, %v906_v8  ;;  %2687 = vmatprep.mubr.msk.bf16.mxu0 %vm245_vm1, %v519_v10 }
  0x41   : > { %2727 = vmatprep.mubr.msk.bf16.mxu1 %vm245_vm1, %v417_v58 }
  0x47   : > { %2688 = vmatmul.mubr.msk.bf16.vlgmr.msra.gmra.mrb[0].mxu0 %vm245_vm1, %v520_v15 }
  0x48   : > { %2728 = vmatmul.mubr.msk.bf16.vlgmr.msra.gmra.mrb[0].mxu1 %vm245_vm1, %v418_v60  ;;  %2736 = vmatpush3.bf16.msra.mxu0 %v1236_v16 }
  0x49   : > { %2776 = vmatpush3.bf16.msra.mxu1 %v1721_v20  ;;  %2691 = vmatprep.mubr.msk.bf16.mxu0 %vm245_vm1, %v521_v17 }
  0x4a   : > { %2731 = vmatprep.mubr.msk.bf16.mxu1 %vm245_vm1, %v419_v63  ;;  %2920 = vmatprep.subr.msk.bf16.mxu0 %vm258_vm0, %v2412_v6 }
  0x4b   : > { %2924 = vmatprep.subr.msk.bf16.mxu1 %vm258_vm0, %v2480_v7 }
  0x4f   : > { %2692 = vmatmul.mubr.msk.bf16.gmra.mrb[4].mxu0 %vm245_vm1, %v522_v11 }
  0x50   : > { %2732 = vmatmul.mubr.msk.bf16.gmra.mrb[4].mxu1 %vm245_vm1, %v420_v5  ;;  %2737 = vmatprep.mubr.msk.bf16.mxu0 %vm245_vm1, %v520_v15 }
  0x51   : > { %2777 = vmatprep.mubr.msk.bf16.mxu1 %vm245_vm1, %v418_v60 }
  0x57   : > { %2738 = vmatmul.mubr.msk.bf16.vlgmr.msra.gmra.mrb[8].mxu0 %vm245_vm1, %v521_v17 }
  0x58   : > { %2746 = vmatpush3.bf16.msra.mxu0 %v1316_v12  ;;  %2778 = vmatmul.mubr.msk.bf16.vlgmr.msra.gmra.mrb[8].mxu1 %vm245_vm1, %v419_v63 }
  0x59   : > { %2786 = vmatpush3.bf16.msra.mxu1 %v1801_v18  ;;  %2741 = vmatprep.mubr.msk.bf16.mxu0 %vm245_vm1, %v522_v11 }
  0x5a   : > { %2781 = vmatprep.mubr.msk.bf16.mxu1 %vm245_vm1, %v420_v5  ;;  %2921 = vmatprep.subr.msk.bf16.mxu0 %vm258_vm0, %v2438_v21 }
  0x5b   : > { %2925 = vmatprep.subr.msk.bf16.mxu1 %vm258_vm0, %v2506_v22 }
  0x5f   : > { %2742 = vmatmul.mubr.msk.bf16.gmra.mrb[12].mxu0 %vm245_vm1, %v1220_v40 }
  0x60   : > { %2782 = vmatmul.mubr.msk.bf16.gmra.mrb[12].mxu1 %vm245_vm1, %v3152_v41  ;;  %2747 = vmatprep.mubr.msk.bf16.mxu0 %vm245_vm1, %v418_v60 }
  0x61   : > { %2787 = vmatprep.mubr.msk.bf16.mxu1 %vm245_vm1, %v904_v61 }
  0x67   : > { %2748 = vmatmul.mubr.msk.bf16.vlgmr.msra.gmra.mrb[8].mxu0 %vm245_vm1, %v419_v63 }
  0x68   : > { %2756 = vmatpush3.bf16.msra.mxu0 %v1410_v23  ;;  %2788 = vmatmul.mubr.msk.bf16.vlgmr.msra.gmra.mrb[8].mxu1 %vm245_vm1, %v905_v1 }
  0x69   : > { %2796 = vmatpush3.bf16.msra.mxu1 %v1895_v26  ;;  %2751 = vmatprep.mubr.msk.bf16.mxu0 %vm245_vm1, %v420_v5 }
  0x6a   : > { %2791 = vmatprep.mubr.msk.bf16.mxu1 %vm245_vm1, %v906_v8  ;;  %2922 = vmatprep.subr.msk.bf16.mxu0 %vm258_vm0, %v2451_v27 }
  0x6b   : > { %2926 = vmatprep.subr.msk.bf16.mxu1 %vm258_vm0, %v2519_v28 }
  0x6f   : > { %2752 = vmatmul.mubr.msk.bf16.gmra.mrb[12].mxu0 %vm245_vm1, %v3152_v41 }
  0x70   : > { %2792 = vmatmul.mubr.msk.bf16.gmra.mrb[12].mxu1 %vm245_vm1, %v1691_v43  ;;  %2757 = vmatprep.mubr.msk.bf16.mxu0 %vm245_vm1, %v3064_v13 }
  0x71   : > { %2797 = vmatprep.mubr.msk.bf16.mxu1 %vm245_vm1, %v3145_v38 }
  0x77   : > { %2758 = vmatmul.mubr.msk.bf16.vlgmr.msra.gmra.mrb[8].mxu0 %vm245_vm1, %v3084_v19 }
  0x78   : > { %2766 = vmatpush3.bf16.msra.mxu0 %v1512_v29  ;;  %2798 = vmatmul.mubr.msk.bf16.vlgmr.msra.gmra.mrb[8].mxu1 %vm245_vm1, %v3171_v48 }
  0x79   : > { %2806 = vmatpush3.bf16.msra.mxu1 %v1997_v30  ;;  %2761 = vmatprep.mubr.msk.bf16.mxu0 %vm245_vm1, %v3106_v25 }
  0x7a   : > { %2801 = vmatprep.mubr.msk.bf16.mxu1 %vm245_vm1, %v3175_v51 }
  0x7f   : > { %2762 = vmatmul.mubr.msk.bf16.gmra.mrb[12].mxu0 %vm245_vm1, %v3139_v35 }
  0x80   : > { %2802 = vmatmul.mubr.msk.bf16.gmra.mrb[12].mxu1 %vm245_vm1, %v3197_v57  ;;  %2767 = vmatprep.mubr.msk.bf16.mxu0 %vm245_vm1, %v3051_v9 }
  0x81   : > { %2807 = vmatprep.mubr.msk.bf16.mxu1 %vm245_vm1, %v3064_v13 }
  0x87   : > { %2768 = vmatmul.mubr.msk.bf16.vlgmr.msra.gmra.mrb[8].mxu0 %vm245_vm1, %v3068_v14 }
  0x88   : > { %2808 = vmatmul.mubr.msk.bf16.vlgmr.msra.gmra.mrb[8].mxu1 %vm245_vm1, %v3084_v19  ;;  %2771 = vmatprep.mubr.msk.bf16.mxu0 %vm245_vm1, %v3102_v24 }
  0x89   : > { %2811 = vmatprep.mubr.msk.bf16.mxu1 %vm245_vm1, %v3106_v25 }
  0x8f   : > { %2772 = vmatmul.mubr.msk.bf16.gmra.mrb[12].mxu0 %vm245_vm1, %v3135_v34 }
  0x90   : > { %2812 = vmatmul.mubr.msk.bf16.gmra.mrb[12].mxu1 %vm245_vm1, %v3139_v35 }
 0x11a   : > { %v2689_v9 = vpop.f32.mrb[0].mxu0 }
 0x11b   : > { %v2545_v13 = vpack.c.bf16 %v2689_v9, %v2689_v9  ;;  %v679_v14 = vmul.f32 %v2689_v9, %v2689_v9  ;;  %v2729_v19 = vpop.f32.mrb[0].mxu1  ;;  %v574_v24 = vpop.f32.mrb[1].mxu0  ;;  %v658_v39 = vsel %vm654_vm3, %v2689_v9, 0.0 }
 0x11c   : > { %v2553_v25 = vpack.c.bf16 %v2729_v19, %v2729_v19  ;;  %v1164_v31 = vmul.f32 %v2729_v19, %v2729_v19  ;;  %v2543_v32 = vpack.c.bf16 %v574_v24, %v574_v24  ;;  %v1060_v33 = vpop.f32.mrb[1].mxu1  ;;  %v2690_v34 = vpop.f32.mrb[2].mxu0  ;;  %v677_v35 = vmul.f32 %v574_v24, %v574_v24 }
 0x11d   : > { %648 = vst.msk [vmem:[%s3336_s5 + $0x8] sm:$0xf] %vm645_vm2, %v2545_v13  ;;  %v2551_v36 = vpack.c.bf16 %v1060_v33, %v1060_v33  ;;  %v2730_v37 = vpop.f32.mrb[2].mxu1  ;;  %v577_v38 = vpop.f32.mrb[3].mxu0  ;;  %v2546_v40 = vpack.c.bf16 %v2690_v34, %v2690_v34  ;;  %v688_v42 = vsel %vm654_vm3, %v679_v14, 0.0  ;;  %v1143_v43 = vsel %vm654_vm3, %v2729_v19, 0.0 }
 0x11e   : > { %2398 = vst.msk [vmem:[%s3336_s5 + $0x28] sm:$0xf] %vm645_vm2, %v2553_v25  ;;  %646 = vst.msk [vmem:[%s3336_s5] sm:$0xf] %vm645_vm2, %v2543_v32  ;;  %v1063_v41 = vpop.f32.mrb[3].mxu1  ;;  %v1162_v44 = vmul.f32 %v1060_v33, %v1060_v33  ;;  %v2554_v45 = vpack.c.bf16 %v2730_v37, %v2730_v37  ;;  %v1173_v46 = vsel %vm654_vm3, %v1164_v31, 0.0  ;;  %v2544_v49 = vpack.c.bf16 %v577_v38, %v577_v38 }
 0x11f   : > { %2396 = vst.msk [vmem:[%s3336_s5 + $0x20] sm:$0xf] %vm645_vm2, %v2551_v36  ;;  %v655_v47 = vsel %vm654_vm3, %v574_v24, 0.0  ;;  %v1140_v48 = vsel %vm654_vm3, %v1060_v33, 0.0  ;;  %649 = vst.msk [vmem:[%s3336_s5 + $0xc] sm:$0xf] %vm645_vm2, %v2546_v40  ;;  %v678_v52 = vmul.f32 %v577_v38, %v577_v38  ;;  %v2552_v53 = vpack.c.bf16 %v1063_v41, %v1063_v41 }
 0x120   : > { %v685_v50 = vsel %vm654_vm3, %v677_v35, 0.0  ;;  %2399 = vst.msk [vmem:[%s3336_s5 + $0x2c] sm:$0xf] %vm645_vm2, %v2554_v45  ;;  %v656_v51 = vsel %vm654_vm3, %v577_v38, 0.0  ;;  %v680_v54 = vmul.f32 %v2690_v34, %v2690_v34  ;;  %647 = vst.msk [vmem:[%s3336_s5 + $0x4] sm:$0xf] %vm645_vm2, %v2544_v49  ;;  %v1163_v57 = vmul.f32 %v1063_v41, %v1063_v41 }
 0x121   : > { %v657_v55 = vadd.f32 %v656_v51, %v655_v47  ;;  %v1141_v56 = vsel %vm654_vm3, %v1063_v41, 0.0  ;;  %v1170_v59 = vsel %vm654_vm3, %v1162_v44, 0.0  ;;  %v686_v60 = vsel %vm654_vm3, %v678_v52, 0.0  ;;  %2397 = vst.msk [vmem:[%s3336_s5 + $0x24] sm:$0xf] %vm645_vm2, %v2552_v53 }
 0x122   : > { %v2693_v58 = vpop.f32.mrb[4].mxu0  ;;  %v1142_v61 = vadd.f32 %v1141_v56, %v1140_v48  ;;  %v1165_v1 = vmul.f32 %v2730_v37, %v2730_v37  ;;  %v687_v3 = vadd.f32 %v686_v60, %v685_v50  ;;  %v1171_v4 = vsel %vm654_vm3, %v1163_v57, 0.0 }
 0x123   : > { %v2549_v62 = vpack.c.bf16 %v2693_v58, %v2693_v58  ;;  %v2733_v63 = vpop.f32.mrb[4].mxu1  ;;  %v590_v0 = vpop.f32.mrb[5].mxu0  ;;  %v659_v2 = vadd.f32 %v658_v39, %v657_v55  ;;  %v660_v10 = vsel %vm654_vm3, %v2690_v34, 0.0  ;;  %v1172_v16 = vadd.f32 %v1171_v4, %v1170_v59 }
 0x124   : > { %v1076_v5 = vpop.f32.mrb[5].mxu1  ;;  %v2694_v8 = vpop.f32.mrb[6].mxu0  ;;  %v1144_v15 = vadd.f32 %v1143_v43, %v1142_v61  ;;  %v2557_v17 = vpack.c.bf16 %v2733_v63, %v2733_v63  ;;  %v690_v7 = vsel %vm654_vm3, %v680_v54, 0.0  ;;  %v1145_v11 = vsel %vm654_vm3, %v2730_v37, 0.0 }
 0x125   : > { %652 = vst.msk [vmem:[%s3336_s5 + $0x18] sm:$0xf] %vm645_vm2, %v2549_v62  ;;  %v2734_v20 = vpop.f32.mrb[6].mxu1  ;;  %v593_v6 = vpop.f32.mrb[7].mxu0  ;;  %v689_v12 = vadd.f32 %v688_v42, %v687_v3  ;;  %v2547_v18 = vpack.c.bf16 %v590_v0, %v590_v0  ;;  %v1174_v22 = vadd.f32 %v1173_v46, %v1172_v16  ;;  %v661_v23 = vadd.f32 %v660_v10, %v659_v2 }
 0x126   : > { %v1079_v21 = vpop.f32.mrb[7].mxu1  ;;  %2402 = vst.msk [vmem:[%s3336_s5 + $0x38] sm:$0xf] %vm645_vm2, %v2557_v17  ;;  %v662_v26 = vsel %vm654_vm3, %v590_v0, 0.0  ;;  %v681_v27 = vmul.f32 %v590_v0, %v590_v0  ;;  %v1175_v28 = vsel %vm654_vm3, %v1165_v1, 0.0  ;;  %v2555_v30 = vpack.c.bf16 %v1076_v5, %v1076_v5 }
 0x127   : > { %650 = vst.msk [vmem:[%s3336_s5 + $0x10] sm:$0xf] %vm645_vm2, %v2547_v18  ;;  %v691_v29 = vadd.f32 %v690_v7, %v689_v12  ;;  %v1146_v9 = vadd.f32 %v1145_v11, %v1144_v15  ;;  %v663_v13 = vadd.f32 %v662_v26, %v661_v23  ;;  %v1147_v19 = vsel %vm654_vm3, %v1076_v5, 0.0 }
 0x128   : > { %v692_v14 = vsel %vm654_vm3, %v681_v27, 0.0  ;;  %v1166_v24 = vmul.f32 %v1076_v5, %v1076_v5  ;;  %2400 = vst.msk [vmem:[%s3336_s5 + $0x30] sm:$0xf] %vm645_vm2, %v2555_v30  ;;  %v1176_v32 = vadd.f32 %v1175_v28, %v1174_v22  ;;  %v2550_v33 = vpack.c.bf16 %v2694_v8, %v2694_v8 }
 0x129   : > { %v693_v25 = vadd.f32 %v692_v14, %v691_v29  ;;  %v1148_v31 = vadd.f32 %v1147_v19, %v1146_v9  ;;  %v2558_v35 = vpack.c.bf16 %v2734_v20, %v2734_v20  ;;  %v666_v36 = vsel %vm654_vm3, %v2693_v58, 0.0 }
 0x12a   : > { %v1177_v34 = vsel %vm654_vm3, %v1166_v24, 0.0  ;;  %653 = vst.msk [vmem:[%s3336_s5 + $0x1c] sm:$0xf] %vm645_vm2, %v2550_v33  ;;  %v2548_v38 = vpack.c.bf16 %v593_v6, %v593_v6  ;;  %v683_v39 = vmul.f32 %v2693_v58, %v2693_v58  ;;  %v664_v40 = vsel %vm654_vm3, %v593_v6, 0.0 }
 0x12b   : > { %v1178_v37 = vadd.f32 %v1177_v34, %v1176_v32  ;;  %2403 = vst.msk [vmem:[%s3336_s5 + $0x3c] sm:$0xf] %vm645_vm2, %v2558_v35  ;;  %v682_v41 = vmul.f32 %v593_v6, %v593_v6  ;;  %v2556_v42 = vpack.c.bf16 %v1079_v21, %v1079_v21  ;;  %v1168_v43 = vmul.f32 %v2733_v63, %v2733_v63 }
 0x12c   : > { %651 = vst.msk [vmem:[%s3336_s5 + $0x14] sm:$0xf] %vm645_vm2, %v2548_v38  ;;  %v665_v44 = vadd.f32 %v664_v40, %v663_v13  ;;  %v1149_v45 = vsel %vm654_vm3, %v1079_v21, 0.0  ;;  %v1167_v46 = vmul.f32 %v1079_v21, %v1079_v21  ;;  %v1151_v47 = vsel %vm654_vm3, %v2733_v63, 0.0 }
 0x12d   : > { %v684_v48 = vmul.f32 %v2694_v8, %v2694_v8  ;;  %v694_v49 = vsel %vm654_vm3, %v682_v41, 0.0  ;;  %2401 = vst.msk [vmem:[%s3336_s5 + $0x34] sm:$0xf] %vm645_vm2, %v2556_v42  ;;  %v1150_v50 = vadd.f32 %v1149_v45, %v1148_v31  ;;  %v1169_v51 = vmul.f32 %v2734_v20, %v2734_v20 }
 0x12e   : > { %v667_v52 = vadd.f32 %v666_v36, %v665_v44  ;;  %v695_v53 = vadd.f32 %v694_v49, %v693_v25  ;;  %v1179_v54 = vsel %vm654_vm3, %v1167_v46, 0.0  ;;  %v696_v55 = vsel %vm654_vm3, %v683_v39, 0.0 }
 0x12f   : > { %v668_v56 = vsel %vm654_vm3, %v2694_v8, 0.0  ;;  %v1152_v57 = vadd.f32 %v1151_v47, %v1150_v50  ;;  %v1180_v58 = vadd.f32 %v1179_v54, %v1178_v37  ;;  %v1181_v59 = vsel %vm654_vm3, %v1168_v43, 0.0 }
 0x130   : > { %v1153_v60 = vsel %vm654_vm3, %v2734_v20, 0.0  ;;  %v669_v61 = vadd.f32 %v668_v56, %v667_v52  ;;  %v697_v62 = vadd.f32 %v696_v55, %v695_v53  ;;  %v698_v63 = vsel %vm654_vm3, %v684_v48, 0.0 }
 0x131   : > { %v1154_v0 = vadd.f32 %v1153_v60, %v1152_v57  ;;  %v1182_v1 = vadd.f32 %v1181_v59, %v1180_v58  ;;  %v1183_v2 = vsel %vm654_vm3, %v1169_v51, 0.0 }
 0x132   : > { %v670_v3 = vrot.slane %v669_v61, 4  ;;  %v699_v4 = vadd.f32 %v698_v63, %v697_v62 }
 0x133   : > { %v1155_v5 = vrot.slane %v1154_v0, 4  ;;  %v1184_v10 = vadd.f32 %v1183_v2, %v1182_v1 }
 0x134   : > { %v671_v15 = vadd.f32 %v670_v3, %v669_v61  ;;  %v700_v8 = vrot.slane %v699_v4, 4 }
 0x135   : > { %v1156_v16 = vadd.f32 %v1155_v5, %v1154_v0  ;;  %v1185_v17 = vrot.slane %v1184_v10, 4 }
 0x136   : > { %v672_v6 = vrot.slane %v671_v15, 2  ;;  %v701_v7 = vadd.f32 %v700_v8, %v699_v4 }
 0x137   : > { %v1157_v11 = vrot.slane %v1156_v16, 2  ;;  %v1186_v20 = vadd.f32 %v1185_v17, %v1184_v10 }
 0x138   : > { %v673_v12 = vadd.f32 %v672_v6, %v671_v15  ;;  %v702_v18 = vrot.slane %v701_v7, 2 }
 0x139   : > { %v1158_v21 = vadd.f32 %v1157_v11, %v1156_v16  ;;  %v1187_v22 = vrot.slane %v1186_v20, 2 }
 0x13a   : > { %v674_v23 = vrot.slane %v673_v12, 1  ;;  %v703_v26 = vadd.f32 %v702_v18, %v701_v7 }
 0x13b   : > { %v1159_v27 = vrot.slane %v1158_v21, 1  ;;  %v1188_v28 = vadd.f32 %v1187_v22, %v1186_v20 }
 0x13c   : > { %v675_v29 = vadd.f32 %v674_v23, %v673_v12  ;;  %v704_v30 = vrot.slane %v703_v26, 1 }
 0x13d   : > { %v1160_v9 = vadd.f32 %v1159_v27, %v1158_v21  ;;  %v1189_v13 = vrot.slane %v1188_v28, 1 }
 0x13e   : > { %v705_v14 = vadd.f32 %v704_v30, %v703_v26 }
 0x13f   : > { %v3402_v19 = vadd.f32 %v1160_v9, %v675_v29  ;;  %v1190_v24 = vadd.f32 %v1189_v13, %v1188_v28 }
 0x141   : > { %v3404_v25 = vadd.f32 %v1190_v24, %v705_v14 }
 0x15a   : > { %v2769_v31 = vpop.f32.mrb[8].mxu0 }
 0x15b   : > { %v2561_v32 = vpack.c.bf16 %v2769_v31, %v2769_v31  ;;  %v1652_v33 = vmul.f32 %v2769_v31, %v2769_v31  ;;  %v2809_v34 = vpop.f32.mrb[8].mxu1  ;;  %v1548_v35 = vpop.f32.mrb[9].mxu0  ;;  %v1631_v45 = vsel %vm654_vm3, %v2769_v31, 0.0 }
 0x15c   : > { %v2569_v36 = vpack.c.bf16 %v2809_v34, %v2809_v34  ;;  %v2137_v37 = vmul.f32 %v2809_v34, %v2809_v34  ;;  %v2559_v38 = vpack.c.bf16 %v1548_v35, %v1548_v35  ;;  %v2033_v39 = vpop.f32.mrb[9].mxu1  ;;  %v2770_v40 = vpop.f32.mrb[10].mxu0  ;;  %v1650_v41 = vmul.f32 %v1548_v35, %v1548_v35 }
 0x15d   : > { %2466 = vst.msk [vmem:[%s3336_s5 + $0x48] sm:$0xf] %vm645_vm2, %v2561_v32  ;;  %v2567_v42 = vpack.c.bf16 %v2033_v39, %v2033_v39  ;;  %v2810_v43 = vpop.f32.mrb[10].mxu1  ;;  %v1551_v44 = vpop.f32.mrb[11].mxu0  ;;  %v2562_v46 = vpack.c.bf16 %v2770_v40, %v2770_v40  ;;  %v1661_v48 = vsel %vm654_vm3, %v1652_v33, 0.0  ;;  %v2116_v49 = vsel %vm654_vm3, %v2809_v34, 0.0 }
 0x15e   : > { %2534 = vst.msk [vmem:[%s3336_s5 + $0x68] sm:$0xf] %vm645_vm2, %v2569_v36  ;;  %2464 = vst.msk [vmem:[%s3336_s5 + $0x40] sm:$0xf] %vm645_vm2, %v2559_v38  ;;  %v2036_v47 = vpop.f32.mrb[11].mxu1  ;;  %v2135_v50 = vmul.f32 %v2033_v39, %v2033_v39  ;;  %v2570_v51 = vpack.c.bf16 %v2810_v43, %v2810_v43  ;;  %v2146_v52 = vsel %vm654_vm3, %v2137_v37, 0.0  ;;  %v2560_v55 = vpack.c.bf16 %v1551_v44, %v1551_v44 }
 0x15f   : > { %2532 = vst.msk [vmem:[%s3336_s5 + $0x60] sm:$0xf] %vm645_vm2, %v2567_v42  ;;  %v1628_v53 = vsel %vm654_vm3, %v1548_v35, 0.0  ;;  %v2113_v54 = vsel %vm654_vm3, %v2033_v39, 0.0  ;;  %2467 = vst.msk [vmem:[%s3336_s5 + $0x4c] sm:$0xf] %vm645_vm2, %v2562_v46  ;;  %v1651_v58 = vmul.f32 %v1551_v44, %v1551_v44  ;;  %v2568_v59 = vpack.c.bf16 %v2036_v47, %v2036_v47 }
 0x160   : > { %v1658_v56 = vsel %vm654_vm3, %v1650_v41, 0.0  ;;  %2535 = vst.msk [vmem:[%s3336_s5 + $0x6c] sm:$0xf] %vm645_vm2, %v2570_v51  ;;  %v1629_v57 = vsel %vm654_vm3, %v1551_v44, 0.0  ;;  %v1653_v60 = vmul.f32 %v2770_v40, %v2770_v40  ;;  %2465 = vst.msk [vmem:[%s3336_s5 + $0x44] sm:$0xf] %vm645_vm2, %v2560_v55  ;;  %v2136_v63 = vmul.f32 %v2036_v47, %v2036_v47 }
 0x161   : > { %v1630_v61 = vadd.f32 %v1629_v57, %v1628_v53  ;;  %v2114_v62 = vsel %vm654_vm3, %v2036_v47, 0.0  ;;  %v2143_v1 = vsel %vm654_vm3, %v2135_v50, 0.0  ;;  %v1659_v2 = vsel %vm654_vm3, %v1651_v58, 0.0  ;;  %2533 = vst.msk [vmem:[%s3336_s5 + $0x64] sm:$0xf] %vm645_vm2, %v2568_v59 }
 0x162   : > { %v2773_v0 = vpop.f32.mrb[12].mxu0  ;;  %v2115_v3 = vadd.f32 %v2114_v62, %v2113_v54  ;;  %v2138_v15 = vmul.f32 %v2810_v43, %v2810_v43  ;;  %v1660_v16 = vadd.f32 %v1659_v2, %v1658_v56  ;;  %v2144_v17 = vsel %vm654_vm3, %v2136_v63, 0.0 }
 0x163   : > { %v2565_v4 = vpack.c.bf16 %v2773_v0, %v2773_v0  ;;  %v2813_v5 = vpop.f32.mrb[12].mxu1  ;;  %v1564_v10 = vpop.f32.mrb[13].mxu0  ;;  %v1632_v8 = vadd.f32 %v1631_v45, %v1630_v61  ;;  %v1633_v11 = vsel %vm654_vm3, %v2770_v40, 0.0  ;;  %v2145_v12 = vadd.f32 %v2144_v17, %v2143_v1 }
 0x164   : > { %v2049_v6 = vpop.f32.mrb[13].mxu1  ;;  %v2774_v7 = vpop.f32.mrb[14].mxu0  ;;  %v2117_v20 = vadd.f32 %v2116_v49, %v2115_v3  ;;  %v2573_v18 = vpack.c.bf16 %v2813_v5, %v2813_v5  ;;  %v1663_v23 = vsel %vm654_vm3, %v1653_v60, 0.0  ;;  %v2118_v26 = vsel %vm654_vm3, %v2810_v43, 0.0 }
 0x165   : > { %2470 = vst.msk [vmem:[%s3336_s5 + $0x58] sm:$0xf] %vm645_vm2, %v2565_v4  ;;  %v2814_v21 = vpop.f32.mrb[14].mxu1  ;;  %v1567_v22 = vpop.f32.mrb[15].mxu0  ;;  %v1662_v27 = vadd.f32 %v1661_v48, %v1660_v16  ;;  %v2563_v28 = vpack.c.bf16 %v1564_v10, %v1564_v10  ;;  %v2147_v30 = vadd.f32 %v2146_v52, %v2145_v12  ;;  %v1634_v9 = vadd.f32 %v1633_v11, %v1632_v8 }
 0x166   : > { %v2052_v29 = vpop.f32.mrb[15].mxu1  ;;  %2538 = vst.msk [vmem:[%s3336_s5 + $0x78] sm:$0xf] %vm645_vm2, %v2573_v18  ;;  %v1635_v13 = vsel %vm654_vm3, %v1564_v10, 0.0  ;;  %v1654_v14 = vmul.f32 %v1564_v10, %v1564_v10  ;;  %v2148_v24 = vsel %vm654_vm3, %v2138_v15, 0.0  ;;  %v2571_v32 = vpack.c.bf16 %v2049_v6, %v2049_v6 }
 0x167   : > { %2468 = vst.msk [vmem:[%s3336_s5 + $0x50] sm:$0xf] %vm645_vm2, %v2563_v28  ;;  %v1664_v31 = vadd.f32 %v1663_v23, %v1662_v27  ;;  %v2119_v33 = vadd.f32 %v2118_v26, %v2117_v20  ;;  %v1636_v34 = vadd.f32 %v1635_v13, %v1634_v9  ;;  %v2120_v36 = vsel %vm654_vm3, %v2049_v6, 0.0 }
 0x168   : > { %v1665_v35 = vsel %vm654_vm3, %v1654_v14, 0.0  ;;  %v2139_v37 = vmul.f32 %v2049_v6, %v2049_v6  ;;  %2536 = vst.msk [vmem:[%s3336_s5 + $0x70] sm:$0xf] %vm645_vm2, %v2571_v32  ;;  %v2149_v40 = vadd.f32 %v2148_v24, %v2147_v30  ;;  %v2566_v41 = vpack.c.bf16 %v2774_v7, %v2774_v7 }
 0x169   : > { %v1666_v38 = vadd.f32 %v1665_v35, %v1664_v31  ;;  %v2121_v39 = vadd.f32 %v2120_v36, %v2119_v33  ;;  %v2574_v43 = vpack.c.bf16 %v2814_v21, %v2814_v21  ;;  %v1639_v44 = vsel %vm654_vm3, %v2773_v0, 0.0 }
 0x16a   : > { %v2150_v42 = vsel %vm654_vm3, %v2139_v37, 0.0  ;;  %2471 = vst.msk [vmem:[%s3336_s5 + $0x5c] sm:$0xf] %vm645_vm2, %v2566_v41  ;;  %v2564_v46 = vpack.c.bf16 %v1567_v22, %v1567_v22  ;;  %v1656_v47 = vmul.f32 %v2773_v0, %v2773_v0  ;;  %v1637_v48 = vsel %vm654_vm3, %v1567_v22, 0.0 }
 0x16b   : > { %v2151_v45 = vadd.f32 %v2150_v42, %v2149_v40  ;;  %2539 = vst.msk [vmem:[%s3336_s5 + $0x7c] sm:$0xf] %vm645_vm2, %v2574_v43  ;;  %v1655_v49 = vmul.f32 %v1567_v22, %v1567_v22  ;;  %v2572_v50 = vpack.c.bf16 %v2052_v29, %v2052_v29  ;;  %v2141_v51 = vmul.f32 %v2813_v5, %v2813_v5 }
 0x16c   : > { %2469 = vst.msk [vmem:[%s3336_s5 + $0x54] sm:$0xf] %vm645_vm2, %v2564_v46  ;;  %v1638_v52 = vadd.f32 %v1637_v48, %v1636_v34  ;;  %v2122_v53 = vsel %vm654_vm3, %v2052_v29, 0.0  ;;  %v2140_v54 = vmul.f32 %v2052_v29, %v2052_v29  ;;  %v2124_v55 = vsel %vm654_vm3, %v2813_v5, 0.0 }
 0x16d   : > { %v1657_v56 = vmul.f32 %v2774_v7, %v2774_v7  ;;  %v1667_v57 = vsel %vm654_vm3, %v1655_v49, 0.0  ;;  %2537 = vst.msk [vmem:[%s3336_s5 + $0x74] sm:$0xf] %vm645_vm2, %v2572_v50  ;;  %v2123_v58 = vadd.f32 %v2122_v53, %v2121_v39  ;;  %v2142_v59 = vmul.f32 %v2814_v21, %v2814_v21 }
 0x16e   : > { %v1640_v60 = vadd.f32 %v1639_v44, %v1638_v52  ;;  %v1668_v61 = vadd.f32 %v1667_v57, %v1666_v38  ;;  %v2152_v62 = vsel %vm654_vm3, %v2140_v54, 0.0  ;;  %v1669_v63 = vsel %vm654_vm3, %v1656_v47, 0.0 }
 0x16f   : > { %v1641_v0 = vsel %vm654_vm3, %v2774_v7, 0.0  ;;  %v2125_v1 = vadd.f32 %v2124_v55, %v2123_v58  ;;  %v2153_v2 = vadd.f32 %v2152_v62, %v2151_v45  ;;  %v2154_v3 = vsel %vm654_vm3, %v2141_v51, 0.0 }
 0x170   : > { %v2126_v4 = vsel %vm654_vm3, %v2814_v21, 0.0  ;;  %v1642_v5 = vadd.f32 %v1641_v0, %v1640_v60  ;;  %v1670_v10 = vadd.f32 %v1669_v63, %v1668_v61  ;;  %v1671_v15 = vsel %vm654_vm3, %v1657_v56, 0.0 }
 0x171   : > { %v2127_v8 = vadd.f32 %v2126_v4, %v2125_v1  ;;  %v2155_v16 = vadd.f32 %v2154_v3, %v2153_v2  ;;  %v2156_v17 = vsel %vm654_vm3, %v2142_v59, 0.0 }
 0x172   : > { %v1643_v6 = vrot.slane %v1642_v5, 4  ;;  %v1672_v11 = vadd.f32 %v1671_v15, %v1670_v10 }
 0x173   : > { %v2128_v20 = vrot.slane %v2127_v8, 4  ;;  %v2157_v12 = vadd.f32 %v2156_v17, %v2155_v16 }
 0x174   : > { %v1644_v18 = vadd.f32 %v1643_v6, %v1642_v5  ;;  %v1673_v7 = vrot.slane %v1672_v11, 4 }
 0x175   : > { %v2129_v22 = vadd.f32 %v2128_v20, %v2127_v8  ;;  %v2158_v23 = vrot.slane %v2157_v12, 4 }
 0x176   : > { %v1645_v26 = vrot.slane %v1644_v18, 2  ;;  %v1674_v27 = vadd.f32 %v1673_v7, %v1672_v11 }
 0x177   : > { %v2130_v21 = vrot.slane %v2129_v22, 2  ;;  %v2159_v28 = vadd.f32 %v2158_v23, %v2157_v12 }
 0x178   : > { %v1646_v29 = vadd.f32 %v1645_v26, %v1644_v18  ;;  %v1675_v30 = vrot.slane %v1674_v27, 2 }
 0x179   : > { %v2131_v9 = vadd.f32 %v2130_v21, %v2129_v22  ;;  %v2160_v13 = vrot.slane %v2159_v28, 2 }
 0x17a   : > { %v1647_v14 = vrot.slane %v1646_v29, 1  ;;  %v1676_v24 = vadd.f32 %v1675_v30, %v1674_v27 }
 0x17b   : > { %v2132_v31 = vrot.slane %v2131_v9, 1  ;;  %v2161_v32 = vadd.f32 %v2160_v13, %v2159_v28 }
 0x17c   : > { %v1648_v33 = vadd.f32 %v1647_v14, %v1646_v29  ;;  %v1677_v34 = vrot.slane %v1676_v24, 1 }
 0x17d   : > { %v2162_v35 = vrot.slane %v2161_v32, 1  ;;  %v2133_v38 = vadd.f32 %v2132_v31, %v2131_v9 }
 0x17e   : > { %v1649_v36 = vadd.f32 %v1648_v33, %v3402_v19  ;;  %v1678_v37 = vadd.f32 %v1677_v34, %v1676_v24 }
 0x17f   : > { %v2163_v41 = vadd.f32 %v2162_v35, %v2161_v32 }
 0x180   : > { %v1679_v39 = vadd.f32 %v1678_v37, %v3404_v25  ;;  %v2134_v40 = vadd.f32 %v2133_v38, %v1649_v36 }
 0x182   : > { %v2164_v42 = vadd.f32 %v2163_v41, %v1679_v39  ;;  %2166 = vst.msk [vmem:[%s212_s9] sm:$0x1] %vm2165_vm4, %v2134_v40 }
 0x184   : > { %2167 = vst.msk [vmem:[%s212_s9 + $0x1] sm:$0x1] %vm2165_vm4, %v2164_v42 }
 0x185 PF: > { %s14_s14 = sadd.s32 1, %s2974_s14   ;;  %s3489_s12 = smov %s2970_s13 }
 0x186   : > { %p11_p5 = scmp.ge.s32.totalorder %s14_s14, 4   ;;  %s3490_s13 = smov %s3492_s15 }
 0x188   :  { %13 = sbr.rel (!%p11_p5) target bundleno = 2 (0x2), region = 91 }

</bundles_post_ra>
